<compile_context>
chip_gen: v7x
topology: tpu7x:2x2x1
jax: 0.10.0
libtpu: 0.0.40
codegen_flags: <defaults>
</compile_context>

<pallas_src>
import functools

import jax
import jax.numpy as jnp
from jax.experimental import pallas as pl
from jax.experimental.pallas import tpu as pltpu


# ------------------------------ fused kernel ------------------------------


def _layernorm_f32(x, gamma, beta, eps):
    mu = jnp.mean(x, axis=-1, keepdims=True)
    xc = x - mu
    var = jnp.mean(xc * xc, axis=-1, keepdims=True)
    return xc * jax.lax.rsqrt(var + eps) * gamma + beta


def _encoder_kernel(
    x_ref, ew_ref, eb_ref, hmask_ref, amask_ref,
    qkvw_ref, qkvb_ref, ow_ref, ob_ref,
    w1_ref, b1_ref, w2_ref, b2_ref,
    g1_ref, be1_ref, g2_ref, be2_ref,
    o_ref,
    *, num_heads, head_dim, eps,
):
    M, E = o_ref.shape
    H, Dh = num_heads, head_dim
    scale = 1.0 / (Dh ** 0.5)
    wdt = qkvw_ref.dtype                      # matmul input dtype (bf16)

    # ---- embedding: first grid step only; result stays resident in o_ref ----
    # NOTE: the o_ref load below must stay AFTER this conditional store.
    @pl.when(pl.program_id(0) == 0)
    def _():
        emb = jnp.dot(x_ref[...].astype(ew_ref.dtype), ew_ref[...],
                      preferred_element_type=jnp.float32) + eb_ref[...]
        o_ref[...] = emb

    h = o_ref[...]                            # (M, E) f32 token slab (resident)
    h_lo = h.astype(wdt)

    # ---- fused QKV projection: one (M, E) @ (E, 3E) dispatch ----
    qkv = (jnp.dot(h_lo, qkvw_ref[0], preferred_element_type=jnp.float32)
           + qkvb_ref[0])                     # (M, 3E) f32
    q = qkv[:, 0:E]
    k = qkv[:, E:2 * E]
    v = qkv[:, 2 * E:3 * E]

    head_mask = hmask_ref[...]                # (H, E): 1 iff column e in head h

    # masked q, flattened to (H*M, E); no k/v broadcast needed
    qh = (q[None, :, :] * head_mask[:, None, :]).reshape(H * M, E).astype(wdt)
    k_lo = k.astype(wdt)
    v_lo = v.astype(wdt)

    # scores[(h*M+m), n] = sum_{e in head h} q[m,e]*k[n,e]  (trans-B, no k.T)
    s = jax.lax.dot_general(
        qh, k_lo, (((1,), (1,)), ((), ())),
        preferred_element_type=jnp.float32) * scale                # (H*M, M)
    s = s + amask_ref[...]                    # additive block-diag batch mask

    m_max = jnp.max(s, axis=-1, keepdims=True)
    p = jnp.exp(s - m_max)
    denom = jnp.sum(p, axis=-1, keepdims=True)
    attn = p * pl.reciprocal(denom, approx=True)                   # (H*M, M)

    pv = jnp.dot(attn.astype(wdt), v_lo,
                 preferred_element_type=jnp.float32)               # (H*M, E)
    ctx = jnp.sum(pv.reshape(H, M, E) * head_mask[:, None, :], axis=0)  # (M, E)

    attn_out = (jnp.dot(ctx.astype(wdt), ow_ref[0],
                        preferred_element_type=jnp.float32) + ob_ref[0])

    h = _layernorm_f32(h + attn_out, g1_ref[0], be1_ref[0], eps)   # post-norm 1

    # ---- feed-forward (relu); w2 stored lane-dense (E, F), contract F ----
    ff = (jnp.dot(h.astype(wdt), w1_ref[0],
                  preferred_element_type=jnp.float32) + b1_ref[0])
    ff = jnp.maximum(ff, 0.0)
    ff2 = (jax.lax.dot_general(
        ff.astype(wdt), w2_ref[0], (((1,), (1,)), ((), ())),
        preferred_element_type=jnp.float32) + b2_ref[0])

    h = _layernorm_f32(h + ff2, g2_ref[0], be2_ref[0], eps)        # post-norm 2
    o_ref[...] = h


# -------------------------------- wrapper ----------------------------------


def temporal_encoder_forward(x, params, num_heads):
    """x: (S, N, input_dim) -> (S, N, embed_dim). One pallas_call total."""
    S, N, in_dim = x.shape
    E = params["eb"].shape[-1]
    F = params["w1"].shape[-1]
    L = params["qkvw"].shape[0]
    M = S * N
    assert E % num_heads == 0
    Dh = E // num_heads
    H = num_heads

    x2d = x.reshape(M, in_dim)

    # host-built masks (loop-invariant; shared inputs with constant index map)
    lane = jnp.arange(E, dtype=jnp.int32)[None, :]
    hid = jnp.arange(H, dtype=jnp.int32)[:, None]
    head_mask = (lane // Dh == hid).astype(jnp.float32)            # (H, E)

    rid = jnp.arange(M, dtype=jnp.int32)[:, None]
    cid = jnp.arange(M, dtype=jnp.int32)[None, :]
    same_batch = (rid % N) == (cid % N)        # tokens flattened (S, N): b = m % N
    mask2d = jnp.where(same_batch, 0.0, -1e30).astype(jnp.float32)  # (M, M)
    attn_mask = jnp.tile(mask2d, (H, 1))                            # (H*M, M)

    def shared(shape):
        return pl.BlockSpec(shape, lambda l: (0,) * len(shape))

    def per_layer(shape):
        return pl.BlockSpec((1,) + shape, lambda l: (l,) + (0,) * len(shape))

    kern = functools.partial(_encoder_kernel, num_heads=num_heads,
                             head_dim=Dh, eps=1e-5)

    out2d = pl.pallas_call(
        kern,
        out_shape=jax.ShapeDtypeStruct((M, E), jnp.float32),
        grid=(L,),
        in_specs=[
            shared((M, in_dim)),                        # x (used at step 0 only)
            shared((in_dim, E)),                        # embedding weight
            shared((1, E)),                             # embedding bias
            shared((H, E)),                             # head selector mask
            shared((H * M, M)),                         # additive batch mask
            per_layer((E, 3 * E)), per_layer((1, 3 * E)),  # fused qkv proj
            per_layer((E, E)), per_layer((1, E)),       # out proj
            per_layer((E, F)), per_layer((1, F)),       # ff linear1
            per_layer((E, F)), per_layer((1, E)),       # ff linear2 (lane-dense, trans-B)
            per_layer((1, E)), per_layer((1, E)),       # norm1 gamma / beta
            per_layer((1, E)), per_layer((1, E)),       # norm2 gamma / beta
        ],
        # same output block every step => token slab stays resident in VMEM
        out_specs=pl.BlockSpec((M, E), lambda l: (0, 0)),
        compiler_params=pltpu.CompilerParams(
            dimension_semantics=("arbitrary",),         # layers are sequential
        ),
    )(x2d, params["ew"], params["eb"], head_mask, attn_mask,
      params["qkvw"], params["qkvb"], params["ow"], params["ob"],
      params["w1"], params["b1"], params["w2"], params["b2"],
      params["g1"], params["be1"], params["g2"], params["be2"])

    return out2d.reshape(S, N, E)


# ------------------------- parameter initialization ------------------------


def init_params(key, input_dim, embed_dim, num_layers, dim_ff,
                param_dtype=jnp.bfloat16):
    """Weights pre-transposed ((in, out)); QKV fused; w2 stored lane-dense (E, F)."""
    E, F, L = embed_dim, dim_ff, num_layers
    keys = jax.random.split(key, 10)

    def w(k, shape, scale=0.05):
        return jax.random.normal(k, shape, jnp.float32) * scale

    return {
        "ew": w(keys[0], (input_dim, E)).astype(param_dtype),
        "eb": w(keys[1], (1, E)),
        "qkvw": w(keys[2], (L, E, 3 * E)).astype(param_dtype),
        "qkvb": w(keys[3], (L, 1, 3 * E)),
        "ow": w(keys[4], (L, E, E)).astype(param_dtype),
        "ob": w(keys[5], (L, 1, E)),
        "w1": w(keys[6], (L, E, F)).astype(param_dtype),
        "b1": w(keys[7], (L, 1, F)),
        "w2": w(keys[8], (L, E, F)).astype(param_dtype),   # lane-dense (E, F)
        "b2": w(keys[9], (L, 1, E)),
        "g1": jnp.ones((L, 1, E), jnp.float32),
        "be1": jnp.zeros((L, 1, E), jnp.float32),
        "g2": jnp.ones((L, 1, E), jnp.float32),
        "be2": jnp.zeros((L, 1, E), jnp.float32),
    }


# ------------------------- pure-JAX reference (check) -----------------------


def reference_forward(x, params, num_heads, eps=1e-5):
    S, N, _ = x.shape
    E = params["eb"].shape[-1]
    H = num_heads
    Dh = E // H
    scale = 1.0 / (Dh ** 0.5)
    L = params["qkvw"].shape[0]
    M = S * N
    wdt = params["ew"].dtype

    def lin(h, w, b):
        return jnp.dot(h.astype(wdt), w, preferred_element_type=jnp.float32) + b

    def ln(h, g, b):
        mu = jnp.mean(h, axis=-1, keepdims=True)
        xc = h - mu
        var = jnp.mean(xc * xc, axis=-1, keepdims=True)
        return xc * jax.lax.rsqrt(var + eps) * g + b

    h = lin(x.reshape(M, -1), params["ew"], params["eb"])
    for l in range(L):
        qkv = lin(h, params["qkvw"][l], params["qkvb"][l])
        q, k, v = qkv[:, 0:E], qkv[:, E:2 * E], qkv[:, 2 * E:3 * E]

        def heads(t):
            return t.reshape(S, N, H, Dh).transpose(1, 2, 0, 3)   # (N, H, S, Dh)

        qh, kh, vh = heads(q), heads(k), heads(v)
        s = jnp.einsum("nhqd,nhkd->nhqk", qh, kh) * scale
        p = jax.nn.softmax(s, axis=-1)
        ctx = jnp.einsum("nhqk,nhkd->nhqd", p, vh)
        ctx = ctx.transpose(2, 0, 1, 3).reshape(M, E)
        attn_out = lin(ctx, params["ow"][l], params["ob"][l])
        h = ln(h + attn_out, params["g1"][l], params["be1"][l])

        ff = jnp.maximum(lin(h, params["w1"][l], params["b1"][l]), 0.0)
        ff = (jax.lax.dot_general(ff.astype(wdt), params["w2"][l],
                                  (((1,), (1,)), ((), ())),
                                  preferred_element_type=jnp.float32)
              + params["b2"][l])
        h = ln(h + ff, params["g2"][l], params["be2"][l])
    return h.reshape(S, N, E)


# ---------------------------------- main ------------------------------------

if __name__ == "__main__":
    # Small shapes consistent with the module: seq=8, batch=2, input_dim=16,
    # embed_dim=32, nhead=8 (head_dim=4), dim_feedforward=2048 (PyTorch
    # default), num_layers=2 for speed.
    S, N, INPUT_DIM, EMBED_DIM = 8, 2, 16, 32
    NUM_HEADS, NUM_LAYERS, DIM_FF = 8, 2, 2048

    key = jax.random.PRNGKey(0)
    kx, kp = jax.random.split(key)
    x = jax.random.normal(kx, (S, N, INPUT_DIM), jnp.float32)
    params = init_params(kp, INPUT_DIM, EMBED_DIM, NUM_LAYERS, DIM_FF)

    fwd = jax.jit(functools.partial(temporal_encoder_forward, num_heads=NUM_HEADS))
    out = jax.block_until_ready(fwd(x, params))

    assert out.shape == (S, N, EMBED_DIM)
    assert bool(jnp.all(jnp.isfinite(out)))

    ref = jax.block_until_ready(reference_forward(x, params, NUM_HEADS))
    max_err = float(jnp.max(jnp.abs(out - ref)))
    assert max_err < 5e-2, f"max abs error vs reference: {max_err}"

    print("KERNEL_OK")
</pallas_src>

<mosaic_0001>
module attributes {stable_mosaic.version = 11 : i64} {
  func.func @_encoder_kernel(%arg0: i32, %arg1: memref<16x16xf32, #tpu.memory_space<vmem>>, %arg2: memref<16x32xbf16, #tpu.memory_space<vmem>>, %arg3: memref<1x32xf32, #tpu.memory_space<vmem>>, %arg4: memref<8x32xf32, #tpu.memory_space<vmem>>, %arg5: memref<128x16xf32, #tpu.memory_space<vmem>>, %arg6: memref<1x32x96xbf16, #tpu.memory_space<vmem>>, %arg7: memref<1x1x96xf32, #tpu.memory_space<vmem>>, %arg8: memref<1x32x32xbf16, #tpu.memory_space<vmem>>, %arg9: memref<1x1x32xf32, #tpu.memory_space<vmem>>, %arg10: memref<1x32x2048xbf16, #tpu.memory_space<vmem>>, %arg11: memref<1x1x2048xf32, #tpu.memory_space<vmem>>, %arg12: memref<1x32x2048xbf16, #tpu.memory_space<vmem>>, %arg13: memref<1x1x32xf32, #tpu.memory_space<vmem>>, %arg14: memref<1x1x32xf32, #tpu.memory_space<vmem>>, %arg15: memref<1x1x32xf32, #tpu.memory_space<vmem>>, %arg16: memref<1x1x32xf32, #tpu.memory_space<vmem>>, %arg17: memref<1x1x32xf32, #tpu.memory_space<vmem>>, %arg18: memref<16x32xf32, #tpu.memory_space<vmem>>) attributes {dimension_semantics = [#tpu.dimension_semantics<arbitrary>], iteration_bounds = array<i64: 2>, scalar_prefetch = 0 : i64, scratch_operands = 0 : i64, tpu.core_type = #tpu.core_type<tc>, window_params = [{pipeline_mode = #tpu.pipeline_mode<synchronous>, transform_indices = @transform_0, window_bounds = array<i64: 16, 16>}, {pipeline_mode = #tpu.pipeline_mode<synchronous>, transform_indices = @transform_1, window_bounds = array<i64: 16, 32>}, {pipeline_mode = #tpu.pipeline_mode<synchronous>, transform_indices = @transform_2, window_bounds = array<i64: 1, 32>}, {pipeline_mode = #tpu.pipeline_mode<synchronous>, transform_indices = @transform_3, window_bounds = array<i64: 8, 32>}, {pipeline_mode = #tpu.pipeline_mode<synchronous>, transform_indices = @transform_4, window_bounds = array<i64: 128, 16>}, {transform_indices = @transform_5, window_bounds = array<i64: 1, 32, 96>}, {transform_indices = @transform_6, window_bounds = array<i64: 1, 1, 96>}, {transform_indices = @transform_7, window_bounds = array<i64: 1, 32, 32>}, {transform_indices = @transform_8, window_bounds = array<i64: 1, 1, 32>}, {transform_indices = @transform_9, window_bounds = array<i64: 1, 32, 2048>}, {transform_indices = @transform_10, window_bounds = array<i64: 1, 1, 2048>}, {transform_indices = @transform_11, window_bounds = array<i64: 1, 32, 2048>}, {transform_indices = @transform_12, window_bounds = array<i64: 1, 1, 32>}, {transform_indices = @transform_13, window_bounds = array<i64: 1, 1, 32>}, {transform_indices = @transform_14, window_bounds = array<i64: 1, 1, 32>}, {transform_indices = @transform_15, window_bounds = array<i64: 1, 1, 32>}, {transform_indices = @transform_16, window_bounds = array<i64: 1, 1, 32>}, {pipeline_mode = #tpu.pipeline_mode<synchronous>, transform_indices = @transform_17, window_bounds = array<i64: 16, 32>}]} {
    %c0_i32 = arith.constant 0 : i32
    %0 = arith.cmpi eq, %arg0, %c0_i32 : i32
    %1 = arith.extui %0 : i1 to i32
    %c0_i32_0 = arith.constant 0 : i32
    %2 = arith.cmpi ne, %1, %c0_i32_0 : i32
    scf.if %2 {
      %c0_64 = arith.constant 0 : index
      %c0_65 = arith.constant 0 : index
      %124 = vector.load %arg1[%c0_64, %c0_65] : memref<16x16xf32, #tpu.memory_space<vmem>>, vector<16x16xf32>
      %125 = arith.truncf %124 : vector<16x16xf32> to vector<16x16xbf16>
      %c0_66 = arith.constant 0 : index
      %c0_67 = arith.constant 0 : index
      %126 = vector.load %arg2[%c0_66, %c0_67] : memref<16x32xbf16, #tpu.memory_space<vmem>>, vector<16x32xbf16>
      %cst_68 = arith.constant dense<0.000000e+00> : vector<16x32xf32>
      %127 = tpu.matmul %125, %126, %cst_68 {dimension_numbers = #tpu.dot_dimension_numbers<[1], [0], [0], [1], [0, 0, 1, 1], [], []>} : vector<16x16xbf16>, vector<16x32xbf16>, vector<16x32xf32> -> vector<16x32xf32>
      %c0_69 = arith.constant 0 : index
      %c0_70 = arith.constant 0 : index
      %128 = vector.load %arg3[%c0_69, %c0_70] : memref<1x32xf32, #tpu.memory_space<vmem>>, vector<1x32xf32>
      %129 = vector.broadcast %128 : vector<1x32xf32> to vector<16x32xf32>
      %130 = arith.addf %127, %129 : vector<16x32xf32>
      %c0_71 = arith.constant 0 : index
      %c0_72 = arith.constant 0 : index
      %131 = vector.load %arg18[%c0_71, %c0_72] : memref<16x32xf32, #tpu.memory_space<vmem>>, vector<16x32xf32>
      tpu.vector_store %arg18[%c0_71, %c0_72], %130 {strides = array<i32>} : memref<16x32xf32, #tpu.memory_space<vmem>>, vector<16x32xf32>,
    } else {
    }
    %c0 = arith.constant 0 : index
    %c0_1 = arith.constant 0 : index
    %3 = vector.load %arg18[%c0, %c0_1] : memref<16x32xf32, #tpu.memory_space<vmem>>, vector<16x32xf32>
    %4 = arith.truncf %3 : vector<16x32xf32> to vector<16x32xbf16>
    %c0_2 = arith.constant 0 : index
    %c0_3 = arith.constant 0 : index
    %c0_4 = arith.constant 0 : index
    %5 = vector.load %arg6[%c0_2, %c0_3, %c0_4] : memref<1x32x96xbf16, #tpu.memory_space<vmem>>, vector<1x32x96xbf16>
    %6 = vector.shape_cast %5 : vector<1x32x96xbf16> to vector<32x96xbf16>
    %cst = arith.constant dense<0.000000e+00> : vector<16x96xf32>
    %7 = tpu.matmul %4, %6, %cst {dimension_numbers = #tpu.dot_dimension_numbers<[1], [0], [0], [1], [0, 0, 1, 1], [], []>} : vector<16x32xbf16>, vector<32x96xbf16>, vector<16x96xf32> -> vector<16x96xf32>
    %c0_5 = arith.constant 0 : index
    %c0_6 = arith.constant 0 : index
    %c0_7 = arith.constant 0 : index
    %8 = vector.load %arg7[%c0_5, %c0_6, %c0_7] : memref<1x1x96xf32, #tpu.memory_space<vmem>>, vector<1x1x96xf32>
    %9 = vector.shape_cast %8 : vector<1x1x96xf32> to vector<1x96xf32>
    %10 = vector.broadcast %9 : vector<1x96xf32> to vector<16x96xf32>
    %11 = arith.addf %7, %10 : vector<16x96xf32>
    %12 = vector.extract_strided_slice %11 {offsets = [0, 0], sizes = [16, 32], strides = [1, 1]} : vector<16x96xf32> to vector<16x32xf32>
    %13 = vector.extract_strided_slice %11 {offsets = [0, 32], sizes = [16, 32], strides = [1, 1]} : vector<16x96xf32> to vector<16x32xf32>
    %14 = vector.extract_strided_slice %11 {offsets = [0, 64], sizes = [16, 32], strides = [1, 1]} : vector<16x96xf32> to vector<16x32xf32>
    %c0_8 = arith.constant 0 : index
    %c0_9 = arith.constant 0 : index
    %15 = vector.load %arg4[%c0_8, %c0_9] : memref<8x32xf32, #tpu.memory_space<vmem>>, vector<8x32xf32>
    %16 = vector.shape_cast %12 : vector<16x32xf32> to vector<1x16x32xf32>
    %17 = vector.shape_cast %15 : vector<8x32xf32> to vector<8x1x32xf32>
    %18 = vector.broadcast %16 : vector<1x16x32xf32> to vector<8x16x32xf32>
    %19 = vector.broadcast %17 : vector<8x1x32xf32> to vector<8x16x32xf32>
    %20 = arith.mulf %18, %19 : vector<8x16x32xf32>
    %21 = vector.shape_cast %20 : vector<8x16x32xf32> to vector<128x32xf32>
    %22 = arith.truncf %21 : vector<128x32xf32> to vector<128x32xbf16>
    %23 = arith.truncf %13 : vector<16x32xf32> to vector<16x32xbf16>
    %24 = arith.truncf %14 : vector<16x32xf32> to vector<16x32xbf16>
    %cst_10 = arith.constant dense<0.000000e+00> : vector<128x16xf32>
    %25 = tpu.matmul %22, %23, %cst_10 {dimension_numbers = #tpu.dot_dimension_numbers<[1], [1], [0], [0], [0, 0, 1, 0], [], []>} : vector<128x32xbf16>, vector<16x32xbf16>, vector<128x16xf32> -> vector<128x16xf32>
    %cst_11 = arith.constant 5.000000e-01 : f32
    %26 = vector.broadcast %cst_11 : f32 to vector<128x16xf32>
    %27 = arith.mulf %25, %26 : vector<128x16xf32>
    %c0_12 = arith.constant 0 : index
    %c0_13 = arith.constant 0 : index
    %28 = vector.load %arg5[%c0_12, %c0_13] : memref<128x16xf32, #tpu.memory_space<vmem>>, vector<128x16xf32>
    %29 = arith.addf %27, %28 : vector<128x16xf32>
    %cst_14 = arith.constant dense<0xFF800000> : vector<128xf32>
    %30 = vector.multi_reduction <maximumf>, %29, %cst_14 [1] : vector<128x16xf32> to vector<128xf32>
    %31 = vector.shape_cast %30 : vector<128xf32> to vector<128x1xf32>
    %32 = vector.broadcast %31 : vector<128x1xf32> to vector<128x16xf32>
    %33 = arith.subf %29, %32 : vector<128x16xf32>
    %34 = math.exp %33 : vector<128x16xf32>
    %cst_15 = arith.constant dense<0.000000e+00> : vector<128xf32>
    %35 = vector.multi_reduction <add>, %34, %cst_15 [1] : vector<128x16xf32> to vector<128xf32>
    %36 = vector.shape_cast %35 : vector<128xf32> to vector<128x1xf32>
    %37 = tpu.reciprocal %36 {approx = true} : vector<128x1xf32> -> vector<128x1xf32>
    %38 = vector.broadcast %37 : vector<128x1xf32> to vector<128x16xf32>
    %39 = arith.mulf %34, %38 : vector<128x16xf32>
    %40 = arith.truncf %39 : vector<128x16xf32> to vector<128x16xbf16>
    %cst_16 = arith.constant dense<0.000000e+00> : vector<128x32xf32>
    %41 = tpu.matmul %40, %24, %cst_16 {dimension_numbers = #tpu.dot_dimension_numbers<[1], [0], [0], [1], [0, 0, 1, 1], [], []>} : vector<128x16xbf16>, vector<16x32xbf16>, vector<128x32xf32> -> vector<128x32xf32>
    %42 = vector.shape_cast %41 : vector<128x32xf32> to vector<8x16x32xf32>
    %43 = vector.shape_cast %15 : vector<8x32xf32> to vector<8x1x32xf32>
    %44 = vector.broadcast %43 : vector<8x1x32xf32> to vector<8x16x32xf32>
    %45 = arith.mulf %42, %44 : vector<8x16x32xf32>
    %cst_17 = arith.constant dense<0.000000e+00> : vector<16x32xf32>
    %46 = vector.multi_reduction <add>, %45, %cst_17 [0] : vector<8x16x32xf32> to vector<16x32xf32>
    %47 = arith.truncf %46 : vector<16x32xf32> to vector<16x32xbf16>
    %c0_18 = arith.constant 0 : index
    %c0_19 = arith.constant 0 : index
    %c0_20 = arith.constant 0 : index
    %48 = vector.load %arg8[%c0_18, %c0_19, %c0_20] : memref<1x32x32xbf16, #tpu.memory_space<vmem>>, vector<1x32x32xbf16>
    %49 = vector.shape_cast %48 : vector<1x32x32xbf16> to vector<32x32xbf16>
    %cst_21 = arith.constant dense<0.000000e+00> : vector<16x32xf32>
    %50 = tpu.matmul %47, %49, %cst_21 {dimension_numbers = #tpu.dot_dimension_numbers<[1], [0], [0], [1], [0, 0, 1, 1], [], []>} : vector<16x32xbf16>, vector<32x32xbf16>, vector<16x32xf32> -> vector<16x32xf32>
    %c0_22 = arith.constant 0 : index
    %c0_23 = arith.constant 0 : index
    %c0_24 = arith.constant 0 : index
    %51 = vector.load %arg9[%c0_22, %c0_23, %c0_24] : memref<1x1x32xf32, #tpu.memory_space<vmem>>, vector<1x1x32xf32>
    %52 = vector.shape_cast %51 : vector<1x1x32xf32> to vector<1x32xf32>
    %53 = vector.broadcast %52 : vector<1x32xf32> to vector<16x32xf32>
    %54 = arith.addf %50, %53 : vector<16x32xf32>
    %55 = arith.addf %3, %54 : vector<16x32xf32>
    %c0_25 = arith.constant 0 : index
    %c0_26 = arith.constant 0 : index
    %c0_27 = arith.constant 0 : index
    %56 = vector.load %arg14[%c0_25, %c0_26, %c0_27] : memref<1x1x32xf32, #tpu.memory_space<vmem>>, vector<1x1x32xf32>
    %57 = vector.shape_cast %56 : vector<1x1x32xf32> to vector<1x32xf32>
    %c0_28 = arith.constant 0 : index
    %c0_29 = arith.constant 0 : index
    %c0_30 = arith.constant 0 : index
    %58 = vector.load %arg15[%c0_28, %c0_29, %c0_30] : memref<1x1x32xf32, #tpu.memory_space<vmem>>, vector<1x1x32xf32>
    %59 = vector.shape_cast %58 : vector<1x1x32xf32> to vector<1x32xf32>
    %cst_31 = arith.constant dense<0.000000e+00> : vector<16xf32>
    %60 = vector.multi_reduction <add>, %55, %cst_31 [1] : vector<16x32xf32> to vector<16xf32>
    %61 = vector.shape_cast %60 : vector<16xf32> to vector<16x1xf32>
    %cst_32 = arith.constant 3.200000e+01 : f32
    %62 = vector.broadcast %cst_32 : f32 to vector<16x1xf32>
    %63 = arith.divf %61, %62 : vector<16x1xf32>
    %64 = vector.broadcast %63 : vector<16x1xf32> to vector<16x32xf32>
    %65 = arith.subf %55, %64 : vector<16x32xf32>
    %66 = arith.mulf %65, %65 : vector<16x32xf32>
    %cst_33 = arith.constant dense<0.000000e+00> : vector<16xf32>
    %67 = vector.multi_reduction <add>, %66, %cst_33 [1] : vector<16x32xf32> to vector<16xf32>
    %68 = vector.shape_cast %67 : vector<16xf32> to vector<16x1xf32>
    %cst_34 = arith.constant 3.200000e+01 : f32
    %69 = vector.broadcast %cst_34 : f32 to vector<16x1xf32>
    %70 = arith.divf %68, %69 : vector<16x1xf32>
    %cst_35 = arith.constant 9.99999974E-6 : f32
    %71 = vector.broadcast %cst_35 : f32 to vector<16x1xf32>
    %72 = arith.addf %70, %71 : vector<16x1xf32>
    %73 = math.rsqrt %72 : vector<16x1xf32>
    %74 = vector.broadcast %73 : vector<16x1xf32> to vector<16x32xf32>
    %75 = arith.mulf %65, %74 : vector<16x32xf32>
    %76 = vector.broadcast %57 : vector<1x32xf32> to vector<16x32xf32>
    %77 = arith.mulf %75, %76 : vector<16x32xf32>
    %78 = vector.broadcast %59 : vector<1x32xf32> to vector<16x32xf32>
    %79 = arith.addf %77, %78 : vector<16x32xf32>
    %80 = arith.truncf %79 : vector<16x32xf32> to vector<16x32xbf16>
    %c0_36 = arith.constant 0 : index
    %c0_37 = arith.constant 0 : index
    %c0_38 = arith.constant 0 : index
    %81 = vector.load %arg10[%c0_36, %c0_37, %c0_38] : memref<1x32x2048xbf16, #tpu.memory_space<vmem>>, vector<1x32x2048xbf16>
    %82 = vector.shape_cast %81 : vector<1x32x2048xbf16> to vector<32x2048xbf16>
    %cst_39 = arith.constant dense<0.000000e+00> : vector<16x2048xf32>
    %83 = tpu.matmul %80, %82, %cst_39 {dimension_numbers = #tpu.dot_dimension_numbers<[1], [0], [0], [1], [0, 0, 1, 1], [], []>} : vector<16x32xbf16>, vector<32x2048xbf16>, vector<16x2048xf32> -> vector<16x2048xf32>
    %c0_40 = arith.constant 0 : index
    %c0_41 = arith.constant 0 : index
    %c0_42 = arith.constant 0 : index
    %84 = vector.load %arg11[%c0_40, %c0_41, %c0_42] : memref<1x1x2048xf32, #tpu.memory_space<vmem>>, vector<1x1x2048xf32>
    %85 = vector.shape_cast %84 : vector<1x1x2048xf32> to vector<1x2048xf32>
    %86 = vector.broadcast %85 : vector<1x2048xf32> to vector<16x2048xf32>
    %87 = arith.addf %83, %86 : vector<16x2048xf32>
    %cst_43 = arith.constant 0.000000e+00 : f32
    %88 = vector.broadcast %cst_43 : f32 to vector<16x2048xf32>
    %89 = arith.maximumf %87, %88 : vector<16x2048xf32>
    %90 = arith.truncf %89 : vector<16x2048xf32> to vector<16x2048xbf16>
    %c0_44 = arith.constant 0 : index
    %c0_45 = arith.constant 0 : index
    %c0_46 = arith.constant 0 : index
    %91 = vector.load %arg12[%c0_44, %c0_45, %c0_46] : memref<1x32x2048xbf16, #tpu.memory_space<vmem>>, vector<1x32x2048xbf16>
    %92 = vector.shape_cast %91 : vector<1x32x2048xbf16> to vector<32x2048xbf16>
    %cst_47 = arith.constant dense<0.000000e+00> : vector<16x32xf32>
    %93 = tpu.matmul %90, %92, %cst_47 {dimension_numbers = #tpu.dot_dimension_numbers<[1], [1], [0], [0], [0, 0, 1, 0], [], []>} : vector<16x2048xbf16>, vector<32x2048xbf16>, vector<16x32xf32> -> vector<16x32xf32>
    %c0_48 = arith.constant 0 : index
    %c0_49 = arith.constant 0 : index
    %c0_50 = arith.constant 0 : index
    %94 = vector.load %arg13[%c0_48, %c0_49, %c0_50] : memref<1x1x32xf32, #tpu.memory_space<vmem>>, vector<1x1x32xf32>
    %95 = vector.shape_cast %94 : vector<1x1x32xf32> to vector<1x32xf32>
    %96 = vector.broadcast %95 : vector<1x32xf32> to vector<16x32xf32>
    %97 = arith.addf %93, %96 : vector<16x32xf32>
    %98 = arith.addf %79, %97 : vector<16x32xf32>
    %c0_51 = arith.constant 0 : index
    %c0_52 = arith.constant 0 : index
    %c0_53 = arith.constant 0 : index
    %99 = vector.load %arg16[%c0_51, %c0_52, %c0_53] : memref<1x1x32xf32, #tpu.memory_space<vmem>>, vector<1x1x32xf32>
    %100 = vector.shape_cast %99 : vector<1x1x32xf32> to vector<1x32xf32>
    %c0_54 = arith.constant 0 : index
    %c0_55 = arith.constant 0 : index
    %c0_56 = arith.constant 0 : index
    %101 = vector.load %arg17[%c0_54, %c0_55, %c0_56] : memref<1x1x32xf32, #tpu.memory_space<vmem>>, vector<1x1x32xf32>
    %102 = vector.shape_cast %101 : vector<1x1x32xf32> to vector<1x32xf32>
    %cst_57 = arith.constant dense<0.000000e+00> : vector<16xf32>
    %103 = vector.multi_reduction <add>, %98, %cst_57 [1] : vector<16x32xf32> to vector<16xf32>
    %104 = vector.shape_cast %103 : vector<16xf32> to vector<16x1xf32>
    %cst_58 = arith.constant 3.200000e+01 : f32
    %105 = vector.broadcast %cst_58 : f32 to vector<16x1xf32>
    %106 = arith.divf %104, %105 : vector<16x1xf32>
    %107 = vector.broadcast %106 : vector<16x1xf32> to vector<16x32xf32>
    %108 = arith.subf %98, %107 : vector<16x32xf32>
    %109 = arith.mulf %108, %108 : vector<16x32xf32>
    %cst_59 = arith.constant dense<0.000000e+00> : vector<16xf32>
    %110 = vector.multi_reduction <add>, %109, %cst_59 [1] : vector<16x32xf32> to vector<16xf32>
    %111 = vector.shape_cast %110 : vector<16xf32> to vector<16x1xf32>
    %cst_60 = arith.constant 3.200000e+01 : f32
    %112 = vector.broadcast %cst_60 : f32 to vector<16x1xf32>
    %113 = arith.divf %111, %112 : vector<16x1xf32>
    %cst_61 = arith.constant 9.99999974E-6 : f32
    %114 = vector.broadcast %cst_61 : f32 to vector<16x1xf32>
    %115 = arith.addf %113, %114 : vector<16x1xf32>
    %116 = math.rsqrt %115 : vector<16x1xf32>
    %117 = vector.broadcast %116 : vector<16x1xf32> to vector<16x32xf32>
    %118 = arith.mulf %108, %117 : vector<16x32xf32>
    %119 = vector.broadcast %100 : vector<1x32xf32> to vector<16x32xf32>
    %120 = arith.mulf %118, %119 : vector<16x32xf32>
    %121 = vector.broadcast %102 : vector<1x32xf32> to vector<16x32xf32>
    %122 = arith.addf %120, %121 : vector<16x32xf32>
    %c0_62 = arith.constant 0 : index
    %c0_63 = arith.constant 0 : index
    %123 = vector.load %arg18[%c0_62, %c0_63] : memref<16x32xf32, #tpu.memory_space<vmem>>, vector<16x32xf32>
    tpu.vector_store %arg18[%c0_62, %c0_63], %122 {strides = array<i32>} : memref<16x32xf32, #tpu.memory_space<vmem>>, vector<16x32xf32>,
    return
  }
  func.func @transform_0(%arg0: i32) -> (i32, i32) {
    %c0_i32 = arith.constant 0 : i32
    %c0_i32_0 = arith.constant 0 : i32
    %c0_i32_1 = arith.constant 0 : i32
    return %c0_i32, %c0_i32_0 : i32, i32
  }
  func.func @transform_1(%arg0: i32) -> (i32, i32) {
    %c0_i32 = arith.constant 0 : i32
    %c0_i32_0 = arith.constant 0 : i32
    %c0_i32_1 = arith.constant 0 : i32
    return %c0_i32, %c0_i32_0 : i32, i32
  }
  func.func @transform_2(%arg0: i32) -> (i32, i32) {
    %c0_i32 = arith.constant 0 : i32
    %c0_i32_0 = arith.constant 0 : i32
    %c0_i32_1 = arith.constant 0 : i32
    return %c0_i32, %c0_i32_0 : i32, i32
  }
  func.func @transform_3(%arg0: i32) -> (i32, i32) {
    %c0_i32 = arith.constant 0 : i32
    %c0_i32_0 = arith.constant 0 : i32
    %c0_i32_1 = arith.constant 0 : i32
    return %c0_i32, %c0_i32_0 : i32, i32
  }
  func.func @transform_4(%arg0: i32) -> (i32, i32) {
    %c0_i32 = arith.constant 0 : i32
    %c0_i32_0 = arith.constant 0 : i32
    %c0_i32_1 = arith.constant 0 : i32
    return %c0_i32, %c0_i32_0 : i32, i32
  }
  func.func @transform_5(%arg0: i32) -> (i32, i32, i32) {
    %c0_i32 = arith.constant 0 : i32
    %c0_i32_0 = arith.constant 0 : i32
    %c0_i32_1 = arith.constant 0 : i32
    return %arg0, %c0_i32, %c0_i32_0 : i32, i32, i32
  }
  func.func @transform_6(%arg0: i32) -> (i32, i32, i32) {
    %c0_i32 = arith.constant 0 : i32
    %c0_i32_0 = arith.constant 0 : i32
    %c0_i32_1 = arith.constant 0 : i32
    return %arg0, %c0_i32, %c0_i32_0 : i32, i32, i32
  }
  func.func @transform_7(%arg0: i32) -> (i32, i32, i32) {
    %c0_i32 = arith.constant 0 : i32
    %c0_i32_0 = arith.constant 0 : i32
    %c0_i32_1 = arith.constant 0 : i32
    return %arg0, %c0_i32, %c0_i32_0 : i32, i32, i32
  }
  func.func @transform_8(%arg0: i32) -> (i32, i32, i32) {
    %c0_i32 = arith.constant 0 : i32
    %c0_i32_0 = arith.constant 0 : i32
    %c0_i32_1 = arith.constant 0 : i32
    return %arg0, %c0_i32, %c0_i32_0 : i32, i32, i32
  }
  func.func @transform_9(%arg0: i32) -> (i32, i32, i32) {
    %c0_i32 = arith.constant 0 : i32
    %c0_i32_0 = arith.constant 0 : i32
    %c0_i32_1 = arith.constant 0 : i32
    return %arg0, %c0_i32, %c0_i32_0 : i32, i32, i32
  }
  func.func @transform_10(%arg0: i32) -> (i32, i32, i32) {
    %c0_i32 = arith.constant 0 : i32
    %c0_i32_0 = arith.constant 0 : i32
    %c0_i32_1 = arith.constant 0 : i32
    return %arg0, %c0_i32, %c0_i32_0 : i32, i32, i32
  }
  func.func @transform_11(%arg0: i32) -> (i32, i32, i32) {
    %c0_i32 = arith.constant 0 : i32
    %c0_i32_0 = arith.constant 0 : i32
    %c0_i32_1 = arith.constant 0 : i32
    return %arg0, %c0_i32, %c0_i32_0 : i32, i32, i32
  }
  func.func @transform_12(%arg0: i32) -> (i32, i32, i32) {
    %c0_i32 = arith.constant 0 : i32
    %c0_i32_0 = arith.constant 0 : i32
    %c0_i32_1 = arith.constant 0 : i32
    return %arg0, %c0_i32, %c0_i32_0 : i32, i32, i32
  }
  func.func @transform_13(%arg0: i32) -> (i32, i32, i32) {
    %c0_i32 = arith.constant 0 : i32
    %c0_i32_0 = arith.constant 0 : i32
    %c0_i32_1 = arith.constant 0 : i32
    return %arg0, %c0_i32, %c0_i32_0 : i32, i32, i32
  }
  func.func @transform_14(%arg0: i32) -> (i32, i32, i32) {
    %c0_i32 = arith.constant 0 : i32
    %c0_i32_0 = arith.constant 0 : i32
    %c0_i32_1 = arith.constant 0 : i32
    return %arg0, %c0_i32, %c0_i32_0 : i32, i32, i32
  }
  func.func @transform_15(%arg0: i32) -> (i32, i32, i32) {
    %c0_i32 = arith.constant 0 : i32
    %c0_i32_0 = arith.constant 0 : i32
    %c0_i32_1 = arith.constant 0 : i32
    return %arg0, %c0_i32, %c0_i32_0 : i32, i32, i32
  }
  func.func @transform_16(%arg0: i32) -> (i32, i32, i32) {
    %c0_i32 = arith.constant 0 : i32
    %c0_i32_0 = arith.constant 0 : i32
    %c0_i32_1 = arith.constant 0 : i32
    return %arg0, %c0_i32, %c0_i32_0 : i32, i32, i32
  }
  func.func @transform_17(%arg0: i32) -> (i32, i32) {
    %c0_i32 = arith.constant 0 : i32
    %c0_i32_0 = arith.constant 0 : i32
    %c0_i32_1 = arith.constant 0 : i32
    return %c0_i32, %c0_i32_0 : i32, i32
  }
}

</mosaic_0001>

<bundles_post_ra>
// kernel: temporal_encoder_forward.1
= control target key start
LH: loop header
LB: loop body
LE: loop exit
PB: predicated region body
PF: predicated region fallthrough
CT: control target
= control target key end

     0   :  { %s4514_s0 = inlined_call_operand.vmem [shape: f32[16,16], index: 0, kind: input, shape index: {}]   ;;  %s4515_s1 = inlined_call_operand.vmem [shape: bf16[16,32], index: 1, kind: input, shape index: {}]   ;;  %s4516_s2 = inlined_call_operand.vmem [shape: f32[1,32], index: 2, kind: input, shape index: {}]   ;;  %s4517_s3 = inlined_call_operand.vmem [shape: f32[8,32], index: 3, kind: input, shape index: {}]   ;;  %s4518_s4 = inlined_call_operand.vmem [shape: f32[128,16], index: 4, kind: input, shape index: {}]   ;;  %s4519_s5 = inlined_call_operand.vmem [shape: bf16[2,32,96], index: 5, kind: input, shape index: {}]   ;;  %s4520_s6 = inlined_call_operand.vmem [shape: f32[2,1,96], index: 6, kind: input, shape index: {}]   ;;  %s4521_s7 = inlined_call_operand.vmem [shape: bf16[2,32,32], index: 7, kind: input, shape index: {}]   ;;  %s4522_s8 = inlined_call_operand.vmem [shape: f32[2,1,32], index: 8, kind: input, shape index: {}]   ;;  %s4523_s9 = inlined_call_operand.hbm [shape: bf16[2,32,2048], index: 9, kind: input, shape index: {}]   ;;  %s4524_s10 = inlined_call_operand.vmem [shape: f32[2,1,2048], index: 10, kind: input, shape index: {}]   ;;  %s4525_s11 = inlined_call_operand.hbm [shape: bf16[2,32,2048], index: 11, kind: input, shape index: {}]   ;;  %s4526_s12 = inlined_call_operand.vmem [shape: f32[2,1,32], index: 12, kind: input, shape index: {}]   ;;  %s4527_s13 = inlined_call_operand.vmem [shape: f32[2,1,32], index: 13, kind: input, shape index: {}]   ;;  %s4528_s14 = inlined_call_operand.vmem [shape: f32[2,1,32], index: 14, kind: input, shape index: {}]   ;;  %s4529_s15 = inlined_call_operand.vmem [shape: f32[2,1,32], index: 15, kind: input, shape index: {}]   ;;  %s4530_s16 = inlined_call_operand.vmem [shape: f32[2,1,32], index: 16, kind: input, shape index: {}]   ;;  %s4531_s17 = inlined_call_operand.hbm [shape: f32[16,32], index: 17, kind: output, shape index: {}]  }
   0x1   :  { %4543 = sst [smem:[#allocation16_spill]] %s4514_s0 }
   0x2   :  { %4544 = sst [smem:[#allocation17_spill]] %s4515_s1 }
   0x3   :  { %4545 = sst [smem:[#allocation18_spill]] %s4517_s3 }
   0x4   :  { %4546 = sst [smem:[#allocation19_spill]] %s4518_s4 }
   0x5   :  { %4547 = sst [smem:[#allocation20_spill]] %s4519_s5 }
   0x6   :  { %4548 = sst [smem:[#allocation21_spill]] %s4521_s7 }
   0x7   :  { %4549 = sst [smem:[#allocation22_spill]] %s4523_s9 }
   0x8   :  { %4550 = sst [smem:[#allocation23_spill]] %s4525_s11 }
   0x9   :  { %4551 = sst [smem:[#allocation24_spill]] %s4531_s17 }
   0xa   :  { %22 = vsyncpa [#allocation3], 0 }
   0xb   :  { %24 = vsyncpa [#allocation3 + $0x1], 0 }
   0xc   :  { %25 = vsyncpa [#allocation6], 0 }
   0xd   :  { %27 = vsyncpa [#allocation6 + $0x1], 0 }
   0xe   :  { %28 = vsyncpa [#allocation4], 0  ;;  %s3672_s24 = smov 0   ;;  %s3674_s25 = smov 0  }
   0xf   :  { %s3676_s26 = smov 0   ;;  %s3678_s27 = smov 0  }
  0x10 LB: > { %4552 = sst [smem:[#allocation11_spill]] %s3557_s25  ;;  %s3691_s28 = sadd.s32 4294967295, %s3565_s27   ;;  %s3565_s27 = sphi %s3678_s27, %s4578_s27   ;;  %s3561_s26 = sphi %s3676_s26, %s4581_s26   ;;  %s3557_s25 = sphi %s3674_s25, %s4580_s25   ;;  %s3553_s24 = sphi %s3672_s24, %s4579_s24  }
  0x11   : > { %4553 = sst [smem:[#allocation12_spill]] %s3561_s26  ;;  %s3694_s29 = sadd.s32 1, %s3565_s27  }
  0x12   : > { %4554 = sst [smem:[#allocation13_spill]] %s3694_s29  ;;  %s247_s0 = ssub.s32 %s3565_s27, %s3694_s29 }
  0x13   : > { %s250_s30 = sadd.s32 1, %s3561_s26  ;;  %p248_p0 = scmp.eq.s32.totalorder %s247_s0, 0 }
  0x14   : > { %p257_p1 = scmp.ne.s32.totalorder %s3561_s26, %s3557_s25  ;;  %p258_p2 = scmp.eq.s32.totalorder %s3565_s27, 0 }
  0x15   : > { %p263_p3 = scmp.ne.s32.totalorder %s3557_s25, %s3553_s24  ;;  %p264_p5 = scmp.eq.s32.totalorder %s3691_s28, 0 }
  0x16   : > { %s3704_s18 = scalar_select %p248_p0, %s3561_s26, %s250_s30  }
  0x17   : > { %p259_p4 = por %p258_p2, %p257_p1  ;;  %p3311_p6 = scmp.lt.s32.totalorder %s3565_s27, 2 }
  0x18   : > { %4555 = sst [smem:[#allocation14_spill]] %s3704_s18  ;;  %p3708_p7 = por %p264_p5, %p263_p3 }
  0x19   : > { %s3713_s1 = sand.u32 1, %s3561_s26   ;;  %s4535_s21 = sshll.u32 %s3565_s27, 12 }
  0x1a   : > { %s4556_s19 = scalar_select %p3708_p7, 1, 0 }
  0x1b   : > { %s4534_s20 = sshll.u32 %s3713_s1, 8  ;;  %s4557_s9 = sld [smem:[#allocation22_spill]] }
  0x1c   : > { %s537_s0 = scalar_lea.vmem [#allocation2], %s4534_s20  ;;  %p3728_p8 = pnand %p3311_p6, %p259_p4 }
  0x1d   : > { %s544_s30 = sshll.u32 %s537_s0, 4  ;;  %s3726_s30 = int_to_ptr.vmem [resolvable:$true] %s544_s30 }
  0x1e   : > { %p3439_p11 = pneg %p3728_p8 }
  0x21   : > { %s3722_s24 = scalar_lea.hbm %s4557_s9, %s4535_s21  ;;  %s3442_s20 = scalar_lea.hbm %s4557_s9, 8192 }
  0x22   : > { %s3437_s22 = scalar_lea.hbm %s3722_s24, 4096  ;;  %p3443_p0 = scmp.lt.u32.totalorder %s3722_s24, %s4557_s9 }
  0x23   : > { %p3438_p10 = scmp.ne.s32.totalorder %s3722_s24, %s3437_s22  ;;  %p3444_p1 = scmp.lt.u32.totalorder %s3442_s20, %s3437_s22 }
  0x24   : > { %p3446_p3 = scmp.lt.u32.totalorder %s3437_s22, %s3722_s24 }
  0x25   : > { %p3440_p12 = pnand %p3439_p11, %p3438_p10  ;;  %p3445_p2 = por %p3444_p1, %p3443_p0 }
  0x27   : > { %p3441_p13 = pneg %p3440_p12  ;;  %p3447_p4 = por %p3446_p3, %p3445_p2 }
  0x29   : > { %p3448_p5 = pnand %p3447_p4, %p3441_p13 }
  0x2b   : > { %3451 = shalt.err (!%p3448_p5)
}
  0x2c   : > { %s3452_s26 = scalar_lea.vmem %s3726_s30, 4096  ;;  %s3567_s23 = smov [#allocation2]  }
  0x2d   : > { %p3453_p6 = scmp.ne.s32.totalorder %s3726_s30, %s3452_s26  ;;  %s3457_s0 = sshll.u32 %s3567_s23, 4  ;;  %s3458_s0 = int_to_ptr.vmem [resolvable:$false] %s3457_s0 }
  0x2e   : > { %s3459_s29 = scalar_lea.vmem %s3458_s0, 8192  ;;  %p3460_p9 = scmp.lt.s32.totalorder %s3726_s30, %s3458_s0 }
  0x2f   : > { %p3455_p10 = pnand %p3453_p6, %p3439_p11  ;;  %p3461_p0 = scmp.lt.s32.totalorder %s3459_s29, %s3452_s26 }
  0x31   : > { %p3456_p12 = pneg %p3455_p10  ;;  %p3462_p1 = por %p3461_p0, %p3460_p9 }
  0x33   : > { %p3463_p2 = pnand %p3462_p1, %p3456_p12 }
  0x35   : > { %3466 = shalt.err (!%p3463_p2)
}
  0x36   : > { %s3568_s20 = smov 1024   ;;  %s3569_s21 = smov 64  }
  0x37   : > { %s4559_s26 = scalar_lea.sflag [#allocation3], %s3713_s1  ;;  %p610_p9 = scmp.lt.s32.totalorder %s3565_s27, 3 }
  0x38   : > { %3307 = dma.hbm_to_vmem [thread:$0]  (!%p3728_p8), %s3722_s24, 4096, %s3726_s30, %s4559_s26, %s3568_s20, %s3568_s20, %s3569_s21  }
  0x39   : > { %s4560_s22 = sshll.u32 %s3565_s27, 12  ;;  %s4561_s11 = sld [smem:[#allocation23_spill]] }
  0x3a   : > { %p4562_p13 = scmp.ge.s32.totalorder %s3565_s27, 1  ;;  %s4564_s17 = sshll.u32 %s3713_s1, 8 }
  0x3b   : > { %s565_s4 = scalar_lea.vmem [#allocation5], %s4564_s17  ;;  %s562_s24 = scalar_lea.sflag [#allocation6], %s3713_s1 }
  0x3c   : > { %p3774_p3 = pnand %p4562_p13, %p610_p9  ;;  %s572_s3 = sshll.u32 %s565_s4, 4  ;;  %s3780_s3 = int_to_ptr.vmem [resolvable:$true] %s572_s3 }
  0x3f   : > { %s3770_s29 = scalar_lea.hbm %s4561_s11, %s4560_s22  ;;  %s3472_s22 = scalar_lea.hbm %s4561_s11, 8192 }
  0x40   : > { %s3467_s30 = scalar_lea.hbm %s3770_s29, 4096  ;;  %p3473_p10 = scmp.lt.u32.totalorder %s3770_s29, %s4561_s11 }
  0x41   : > { %p3468_p4 = scmp.ne.s32.totalorder %s3770_s29, %s3467_s30  ;;  %p3474_p12 = scmp.lt.u32.totalorder %s3472_s22, %s3467_s30 }
  0x42   : > { %p3476_p1 = scmp.lt.u32.totalorder %s3467_s30, %s3770_s29 }
  0x43   : > { %p3470_p5 = pnand %p3468_p4, %p3439_p11  ;;  %p3475_p0 = por %p3474_p12, %p3473_p10 }
  0x45   : > { %p3471_p6 = pneg %p3470_p5  ;;  %p3477_p2 = por %p3476_p1, %p3475_p0 }
  0x47   : > { %p3478_p9 = pnand %p3477_p2, %p3471_p6 }
  0x49   : > { %3481 = shalt.err (!%p3478_p9)
}
  0x4a   : > { %s3482_s4 = scalar_lea.vmem %s3780_s3, 4096  ;;  %s3570_s17 = smov [#allocation5]  }
  0x4b   : > { %p3483_p13 = scmp.ne.s32.totalorder %s3780_s3, %s3482_s4  ;;  %s3487_s27 = sshll.u32 %s3570_s17, 4  ;;  %s3488_s27 = int_to_ptr.vmem [resolvable:$false] %s3487_s27 }
  0x4c   : > { %s3489_s26 = scalar_lea.vmem %s3488_s27, 8192  ;;  %p3490_p7 = scmp.lt.s32.totalorder %s3780_s3, %s3488_s27 }
  0x4d   : > { %p3485_p4 = pnand %p3483_p13, %p3439_p11  ;;  %p3491_p10 = scmp.lt.s32.totalorder %s3489_s26, %s3482_s4 }
  0x4f   : > { %p3486_p5 = pneg %p3485_p4  ;;  %p3492_p12 = por %p3491_p10, %p3490_p7 }
  0x51   : > { %p3493_p0 = pnand %p3492_p12, %p3486_p5 }
  0x53   : > { %3496 = shalt.err (!%p3493_p0)
}
  0x54   : > { %3310 = dma.hbm_to_vmem [thread:$0]  (!%p3728_p8), %s3770_s29, 4096, %s3780_s3, %s562_s24, %s3568_s20, %s3568_s20, %s3569_s21  }
  0x55   : > { %614 = sbr.rel (%p3774_p3) target bundleno = 2854 (0xb26), region = 88 }
  0x5c   : > { %s616_s30 = sand.u32 1, %s3557_s25   ;;  %p4565_p7 = scmp.ne.s32.totalorder %s4556_s19, 0 }
  0x5d   : > { %s3091_s22 = sshll.u32 %s616_s30, 8  ;;  %s617_s23 = scalar_lea.sflag [#allocation3], %s616_s30 }
  0x5e   : > { %s3814_s0 = scalar_lea.vmem [#allocation2], %s3091_s22 }
  0x5f   : > { %3540 = dma.done.wait (%p4565_p7), %s617_s23, 4096  }
  0x60   : > { %3542 = vsyncadd (%p4565_p7), %s617_s23, 4294963200  ;;  %s626_s18 = scalar_lea.sflag [#allocation6], %s616_s30  ;;  %s3820_s1 = scalar_lea.vmem [#allocation5], %s3091_s22 }
  0x61   : > { %4566 = sst [smem:[#allocation15_spill]] %s3820_s1 }
  0x62   : > { %3544 = dma.done.wait (%p4565_p7), %s626_s18, 4096  }
  0x63   : > { %3546 = vsyncadd (%p4565_p7), %s626_s18, 4294963200  ;;  %p715_p8 = scmp.lt.s32.totalorder %s3691_s28, 1  ;;  %s4567_s5 = sld [smem:[#allocation20_spill]] }
  0x64   : > { %s4568_s7 = sld [smem:[#allocation21_spill]]  ;;  %p3098_p11 = scmp.ne.s32.totalorder %s3691_s28, 0 }
  0x65   : > { %s3828_s3 = scalar_select %p715_p8, %s3691_s28, 1 }
  0x66   : > { %754 = sbr.rel (%p3098_p11) target bundleno = 333 (0x14d), region = 100  ;;  %s4569_s21 = sld [smem:[#allocation17_spill]] (!%p3098_p11)  ;;  %v3571_v1 = vmov (!%p3098_p11), 0.0   ;;  %vm3572_vm0 = vmmov (!%p3098_p11), 0   ;;  %vm773_vm1 = vcmask (!%p3098_p11), 130048   ;;  %vm818_vm2 = vcmask (!%p3098_p11), 261120  }
  0x67   : > { %s3209_s9 = sshll.u32 %s3828_s3, 4  ;;  %s737_s19 = scalar_lea.vmem %s4526_s12, %s3828_s3  ;;  %3237 = vmatprep.subr.bf16.mxu0 (!%p3098_p11), %v3571_v1  ;;  %3239 = vmatprep.mubr.msk.bf16.mxu0 (!%p3098_p11), %vm3572_vm0, %v3571_v1  ;;  %v3099_v5 = vld [vmem:[%s4516_s2] ss:$0 sm:$0xff] (!%p3098_p11) }
  0x68   : > { %s3852_s25 = scalar_lea.vmem %s4524_s10, %s3209_s9  ;;  %s746_s22 = scalar_lea.vmem %s4529_s15, %s3828_s3 }
  0x69   : > { %s3838_s4 = scalar_lea.vmem %s4567_s5, %s3209_s9  ;;  %s740_s5 = scalar_lea.vmem %s4527_s13, %s3828_s3 }
  0x6a   : > { %s3843_s26 = scalar_lea.vmem %s4568_s7, %s3209_s9  ;;  %s743_s7 = scalar_lea.vmem %s4528_s14, %s3828_s3 }
  0x6b   : > { %s749_s9 = scalar_lea.vmem %s4530_s16, %s3828_s3  ;;  %s4570_s17 = sld [smem:[#allocation16_spill]] (!%p3098_p11) }
  0x6c   : > { %v3359_v0 = vld [vmem:[%s4569_s21] sm:$0xff] (!%p3098_p11)  }
  0x6d   : > { %3238 = vmatpush3.bf16.msra.mxu0 %v3359_v0 }
  0x71   : > { %v755_v2 = vld [vmem:[%s4570_s17] sm:$0xff]  ;;  %v756_v3 = vld [vmem:[%s4570_s17 + $0x8] sm:$0xff] }
  0x72   : > { %v757_v4 = vpack.c.bf16 %v756_v3, %v755_v2 }
  0x74   : > { %3240 = vmatmul.mubr.msk.bf16.vlgmr.msra.gmra.mrb[0].mxu0 %vm773_vm1, %v757_v4 }
 0x147   : > { %v811_v6 = vpop.f32.mrb[0].mxu0 }
 0x148   : > { %v812_v7 = vadd.f32 %v3099_v5, %v811_v6  ;;  %v3241_v8 = vpop.f32.mrb[1].mxu0 }
 0x149   : > { %v814_v9 = vpop.f32.mrb[2].mxu0 }
 0x14a   : > { %819 = vst.msk [vmem:[#allocation7] sm:$0xff] %vm818_vm2, %v812_v7  ;;  %v815_v10 = vadd.f32 %v3099_v5, %v814_v9  ;;  %v3242_v11 = vpop.f32.mrb[3].mxu0 }
 0x14c   : > { %820 = vst.msk [vmem:[#allocation7 + $0x8] sm:$0xff] %vm818_vm2, %v815_v10 }
 0x14d PF: > { %v3360_v12 = vld [vmem:[%s3838_s4] sm:$0xff]   ;;  %v3573_v13 = vmov 0.0   ;;  %v3361_v14 = vld [vmem:[%s3838_s4 + $0x8] sm:$0xff]   ;;  %vm3574_vm3 = vmmov 0   ;;  %vm847_vm4 = vcmask 261120   ;;  %v898_v20 = vlaneseq  ;;  %s4571_s18 = sld [smem:[#allocation18_spill]]  ;;  %s4572_s29 = scalar_lea.vmem %s4520_s6, %s3828_s3 }
 0x14e   : > { %3243 = vmatprep.subr.bf16.mxu0 %v3573_v13  ;;  %3247 = vmatprep.mubr.msk.bf16.mxu0 %vm3574_vm3, %v3573_v13  ;;  %v3575_v18 = vmov 1966171168   ;;  %v3102_v38 = vld [vmem:[%s4572_s29] ss:$0 sm:$0xff]  ;;  %s3576_s24 = smov 96   ;;  %s4573_s23 = sld [smem:[#allocation19_spill]] }
 0x14f   : > { %3244 = vmatpush3.bf16.msra.mxu0 %v3360_v12  ;;  %v896_v19 = vunpack.c.l.s4 %v3575_v18  ;;  %v3900_v22 = vshrl.u32 %v898_v20, 7  ;;  %vm1183_vm5 = vcmask 130048   ;;  %s3577_s30 = smov 64   ;;  %s4574_s11 = scalar_lea.vmem %s4522_s8, %s3828_s3 }
 0x150   : > { %3245 = vmatprep.subr.bf16.mxu0 %v3573_v13  ;;  %s3579_s1 = smov [#allocation7]   ;;  %p3312_p3 = scmp.eq.s32.totalorder %s3691_s28, 1 }
 0x151   : > { %v3892_v15 = vld [vmem:[#allocation7] sm:$0xff]  ;;  %v897_v21 = vunpack.c.0.s8 %v896_v19  ;;  %v3907_v35 = vsub.s32 0, %v3900_v22 }
 0x153   : > { %v3894_v16 = vld [vmem:[#allocation7 + $0x8] sm:$0xff]  ;;  %3246 = vmatpush3.bf16.msra.mxu0 %v3361_v14  ;;  %v892_v23 = vld [vmem:[%s4571_s18] sm:$0xff]  ;;  %v900_v25 = vsub.s32 %v897_v21, %v3900_v22 }
 0x154   : > { %v823_v17 = vpack.c.bf16 %v3894_v16, %v3892_v15  ;;  %v894_v24 = vcombine.high %v892_v23, %v892_v23  ;;  %v1153_v21 = vld [vmem:[%s4573_s23 + $0x10] sm:$0xff] }
 0x155   : > { %v901_v26 = vrot.slane %v892_v23, %v900_v25 }
 0x156   : > { %3248 = vmatmul.mubr.msk.bf16.vlgmr.msra.gmra.mrb[0].mxu0 %vm847_vm4, %v823_v17  ;;  %v908_v27 = vrot.slane %v894_v24, %v900_v25 }
 0x157   : > { %v909_v28 = vcombine.high %v901_v26, %v901_v26  ;;  %v917_v33 = vrot.slane %v901_v26, %v900_v25 }
 0x158   : > { %v910_v29 = vcombine.high %v908_v27, %v908_v27  ;;  %v924_v31 = vrot.slane %v908_v27, %v900_v25 }
 0x159   : > { %v931_v30 = vrot.slane %v909_v28, %v900_v25  ;;  %v939_v34 = vcombine.high %v917_v33, %v917_v33  ;;  %v3915_v40 = vrot.slane %v917_v33, %v3907_v35  ;;  %v1154_v28 = vld [vmem:[%s4573_s23 + $0x18] sm:$0xff] }
 0x15a   : > { %v938_v32 = vrot.slane %v910_v29, %v900_v25  ;;  %v940_v37 = vcombine.high %v924_v31, %v924_v31  ;;  %v3927_v45 = vrot.slane %v924_v31, %v3907_v35  ;;  %v1151_v25 = vld [vmem:[%s4573_s23] sm:$0xff] }
 0x15b   : > { %v941_v36 = vcombine.high %v931_v30, %v931_v30  ;;  %v3918_v41 = vrot.slane %v931_v30, %v3907_v35  ;;  %v3921_v42 = vrot.slane %v939_v34, %v3907_v35 }
 0x15c   : > { %v942_v39 = vcombine.high %v938_v32, %v938_v32  ;;  %v3930_v46 = vrot.slane %v938_v32, %v3907_v35  ;;  %v3933_v47 = vrot.slane %v940_v37, %v3907_v35 }
 0x15d   : > { %v3924_v44 = vrot.slane %v941_v36, %v3907_v35 }
 0x15e   : > { %v3936_v51 = vrot.slane %v942_v39, %v3907_v35 }
 0x229   : > { %v885_v43 = vpop.f32.mrb[0].mxu0 }
 0x22a   : > { %v886_v48 = vadd.f32 %v3102_v38, %v885_v43  ;;  %v3249_v49 = vpop.f32.mrb[1].mxu0 }
 0x22b   : > { %v888_v50 = vpop.f32.mrb[2].mxu0 }
 0x22c   : > { %v889_v52 = vadd.f32 %v3102_v38, %v888_v50  ;;  %v3250_v53 = vpop.f32.mrb[3].mxu0  ;;  %v983_v54 = vmul.f32 %v3915_v40, %v886_v48  ;;  %v985_v55 = vmul.f32 %v3918_v41, %v886_v48  ;;  %v987_v56 = vmul.f32 %v3921_v42, %v886_v48  ;;  %v1152_v38 = vld [vmem:[%s4573_s23 + $0x8] sm:$0xff] }
 0x22d   : > { %v989_v57 = vmul.f32 %v3924_v44, %v886_v48  ;;  %v991_v58 = vmul.f32 %v3927_v45, %v886_v48  ;;  %v993_v59 = vmul.f32 %v3930_v46, %v886_v48  ;;  %v995_v60 = vmul.f32 %v3933_v47, %v886_v48  ;;  %v1157_v53 = vld [vmem:[%s4573_s23 + $0x30] sm:$0xff] }
 0x22e   : > { %v3945_v61 = vpack.c.bf16 %v889_v52, %v886_v48  ;;  %v984_v62 = vmul.f32 %v3915_v40, %v889_v52  ;;  %v986_v63 = vmul.f32 %v3918_v41, %v889_v52  ;;  %v988_v0 = vmul.f32 %v3921_v42, %v889_v52 }
 0x22f   : > { %v990_v1 = vmul.f32 %v3924_v44, %v889_v52  ;;  %v992_v2 = vmul.f32 %v3927_v45, %v889_v52  ;;  %v994_v3 = vmul.f32 %v3930_v46, %v889_v52  ;;  %v996_v4 = vmul.f32 %v3933_v47, %v889_v52 }
 0x230   : > { %1009 = vrot.lane.b32.xlu0 %v3945_v61, %s3576_s24  ;;  %v999_v5 = vpack.c.bf16 %v984_v62, %v983_v54  ;;  %v1000_v6 = vpack.c.bf16 %v986_v63, %v985_v55  ;;  %v1001_v7 = vpack.c.bf16 %v988_v0, %v987_v56  ;;  %v997_v12 = vmul.f32 %v3936_v51, %v886_v48 }
 0x231   : > { %v1002_v8 = vpack.c.bf16 %v990_v1, %v989_v57  ;;  %v1003_v9 = vpack.c.bf16 %v992_v2, %v991_v58  ;;  %v1004_v10 = vpack.c.bf16 %v994_v3, %v993_v59  ;;  %v1005_v11 = vpack.c.bf16 %v996_v4, %v995_v60  ;;  %v1155_v58 = vld [vmem:[%s4573_s23 + $0x20] sm:$0xff]  ;;  %v1161_v60 = vld [vmem:[%s4573_s23 + $0x50] sm:$0xff]  ;;  %v1158_v4 = vld [vmem:[%s4573_s23 + $0x38] sm:$0xff] }
 0x232   : > { %3253 = vmatprep.mubr.msk.bf16.mxu1 %vm847_vm4, %v999_v5  ;;  %v998_v14 = vmul.f32 %v3936_v51, %v889_v52 }
 0x234   : > { %v1006_v17 = vpack.c.bf16 %v998_v14, %v997_v12 }
 0x2a2   : > { %v1010_v18 = vpop.permute.xlu0 %1009 }
 0x2a3   : > { %3295 = vmatprep.subr.msk.bf16.mxu1 %vm847_vm4, %v1010_v18  ;;  %v1036_v19 = vsel %vm847_vm4, %v1010_v18, 0 }
 0x2a4   : > { %3252 = vmatpush3.bf16.xpose.msra.mxu1 %v1036_v19 }
 0x2a5   : > { %3287 = vmatprep.subr.bf16.mxu1 %v3573_v13 }
 0x2ab   : > { %3254 = vmatmul.mubr.msk.bf16.vlgmr.msra.gmra.mrb[0].mxu1 %vm847_vm4, %v1000_v6 }
 0x2ac   : > { %3257 = vmatprep.mubr.msk.bf16.mxu1 %vm847_vm4, %v1001_v7 }
 0x2b3   : > { %3258 = vmatmul.mubr.msk.bf16.gmra.mrb[4].mxu1 %vm847_vm4, %v1002_v8 }
 0x2b4   : > { %3261 = vmatprep.mubr.msk.bf16.mxu1 %vm847_vm4, %v1003_v9 }
 0x2bb   : > { %3262 = vmatmul.mubr.msk.bf16.gmra.mrb[8].mxu1 %vm847_vm4, %v1004_v10 }
 0x2bc   : > { %3265 = vmatprep.mubr.msk.bf16.mxu1 %vm847_vm4, %v1005_v11  ;;  %v1156_v11 = vld [vmem:[%s4573_s23 + $0x28] sm:$0xff] }
 0x2c3   : > { %3266 = vmatmul.mubr.msk.bf16.gmra.mrb[12].mxu1 %vm847_vm4, %v1006_v17 }
 0x2c4   : > { %3291 = vmatprep.mubr.msk.bf16.mxu1 %vm3574_vm3, %v3573_v13 }
 0x37e   : > { %v3255_v20 = vpop.f32.mrb[0].mxu1 }
 0x37f   : > { %v1137_v23 = vmul.f32 0.5, %v3255_v20  ;;  %v1072_v24 = vpop.f32.mrb[1].mxu1  ;;  %v1163_v20 = vld [vmem:[%s4573_s23 + $0x60] sm:$0xff] }
 0x380   : > { %v1135_v26 = vmul.f32 0.5, %v1072_v24  ;;  %v3256_v27 = vpop.f32.mrb[2].mxu1 }
 0x381   : > { %v1138_v29 = vmul.f32 0.5, %v3256_v27  ;;  %v1075_v30 = vpop.f32.mrb[3].mxu1  ;;  %v3979_v31 = vadd.f32 %v1153_v21, %v1137_v23  ;;  %v1165_v27 = vld [vmem:[%s4573_s23 + $0x70] sm:$0xff] }
 0x382   : > { %v3981_v32 = vadd.f32 %v1151_v25, %v1135_v26  ;;  %v1136_v33 = vmul.f32 0.5, %v1075_v30  ;;  %v1159_v25 = vld [vmem:[%s4573_s23 + $0x40] sm:$0xff] }
 0x383   : > { %v1190_v34 = vsel %vm1183_vm5, %v3979_v31, -inf  ;;  %v3985_v36 = vadd.f32 %v1154_v28, %v1138_v29 }
 0x384   : > { %1191 = vmax.xlane.f32.xlu1 %v1190_v34  ;;  %v1184_v37 = vsel %vm1183_vm5, %v3981_v32, -inf  ;;  %v3994_v50 = vadd.f32 %v1152_v38, %v1136_v33  ;;  %v1160_v38 = vld [vmem:[%s4573_s23 + $0x48] sm:$0xff] }
 0x385   : > { %1185 = vmax.xlane.f32.xlu0 %v1184_v37  ;;  %v1193_v49 = vsel %vm1183_vm5, %v3985_v36, -inf }
 0x386   : > { %v3259_v39 = vpop.f32.mrb[4].mxu1  ;;  %v1187_v56 = vsel %vm1183_vm5, %v3994_v50, -inf }
 0x387   : > { %v1141_v43 = vmul.f32 0.5, %v3259_v39  ;;  %v1088_v48 = vpop.f32.mrb[5].mxu1 }
 0x388   : > { %1194 = vmax.xlane.f32.xlu1 %v1193_v49  ;;  %v3260_v52 = vpop.f32.mrb[6].mxu1  ;;  %v1139_v55 = vmul.f32 0.5, %v1088_v48 }
 0x389   : > { %v1091_v54 = vpop.f32.mrb[7].mxu1  ;;  %v4001_v57 = vadd.f32 %v1157_v53, %v1141_v43  ;;  %v1142_v62 = vmul.f32 0.5, %v3260_v52  ;;  %v1162_v52 = vld [vmem:[%s4573_s23 + $0x58] sm:$0xff] }
 0x38a   : > { %v4011_v2 = vadd.f32 %v1155_v58, %v1139_v55  ;;  %v1140_v7 = vmul.f32 0.5, %v1091_v54 }
 0x38b   : > { %v1202_v1 = vsel %vm1183_vm5, %v4001_v57, -inf  ;;  %v4022_v10 = vadd.f32 %v1158_v4, %v1142_v62  ;;  %v1166_v62 = vld [vmem:[%s4573_s23 + $0x78] sm:$0xff] }
 0x38c   : > { %1188 = vmax.xlane.f32.xlu1 %v1187_v56  ;;  %v1196_v8 = vsel %vm1183_vm5, %v4011_v2, -inf  ;;  %v4029_v19 = vadd.f32 %v1156_v11, %v1140_v7  ;;  %v1164_v56 = vld [vmem:[%s4573_s23 + $0x68] sm:$0xff] }
 0x38d   : > { %v1205_v18 = vsel %vm1183_vm5, %v4022_v10, -inf }
 0x38e   : > { %v3263_v59 = vpop.f32.mrb[8].mxu1  ;;  %v1199_v30 = vsel %vm1183_vm5, %v4029_v19, -inf }
 0x38f   : > { %v1145_v63 = vmul.f32 0.5, %v3263_v59  ;;  %v1104_v0 = vpop.f32.mrb[9].mxu1 }
 0x390   : > { %1203 = vmax.xlane.f32.xlu1 %v1202_v1  ;;  %v3264_v3 = vpop.f32.mrb[10].mxu1  ;;  %v1143_v14 = vmul.f32 0.5, %v1104_v0 }
 0x391   : > { %v1107_v5 = vpop.f32.mrb[11].mxu1  ;;  %v4016_v6 = vadd.f32 %v1161_v60, %v1145_v63  ;;  %v1146_v39 = vmul.f32 0.5, %v3264_v3 }
 0x392   : > { %v1144_v29 = vmul.f32 0.5, %v1107_v5  ;;  %v4044_v33 = vadd.f32 %v1159_v25, %v1143_v14 }
 0x393   : > { %v1214_v9 = vsel %vm1183_vm5, %v4016_v6, -inf  ;;  %v4064_v55 = vadd.f32 %v1162_v52, %v1146_v39 }
 0x394   : > { %1197 = vmax.xlane.f32.xlu1 %v1196_v8  ;;  %1215 = vmax.xlane.f32.xlu0 %v1214_v9  ;;  %v1208_v43 = vsel %vm1183_vm5, %v4044_v33, -inf  ;;  %v4055_v48 = vadd.f32 %v1160_v38, %v1144_v29 }
 0x395   : > { %v1217_v59 = vsel %vm1183_vm5, %v4064_v55, -inf }
 0x396   : > { %v3267_v12 = vpop.f32.mrb[12].mxu1  ;;  %v1211_v54 = vsel %vm1183_vm5, %v4055_v48, -inf }
 0x397   : > { %v1120_v17 = vpop.f32.mrb[13].mxu1  ;;  %v1149_v21 = vmul.f32 0.5, %v3267_v12 }
 0x398   : > { %v1147_v23 = vmul.f32 0.5, %v1120_v17  ;;  %1206 = vmax.xlane.f32.xlu1 %v1205_v18  ;;  %v3268_v24 = vpop.f32.mrb[14].mxu1 }
 0x399   : > { %v1123_v26 = vpop.f32.mrb[15].mxu1  ;;  %v4048_v37 = vadd.f32 %v1165_v27, %v1149_v21  ;;  %v1150_v58 = vmul.f32 0.5, %v3268_v24 }
 0x39a   : > { %v4040_v28 = vadd.f32 %v1163_v20, %v1147_v23  ;;  %v1148_v53 = vmul.f32 0.5, %v1123_v26 }
 0x39b   : > { %v1226_v49 = vsel %vm1183_vm5, %v4048_v37, -inf  ;;  %v4078_v0 = vadd.f32 %v1166_v62, %v1150_v58 }
 0x39c   : > { %1200 = vmax.xlane.f32.xlu1 %v1199_v30  ;;  %v1220_v34 = vsel %vm1183_vm5, %v4040_v28, -inf  ;;  %v4071_v60 = vadd.f32 %v1164_v56, %v1148_v53 }
 0x39d   : > { %1221 = vmax.xlane.f32.xlu0 %v1220_v34  ;;  %v1229_v1 = vsel %vm1183_vm5, %v4078_v0, -inf }
 0x39e   : > { %v1223_v63 = vsel %vm1183_vm5, %v4071_v60, -inf }
 0x3a0   : > { %1209 = vmax.xlane.f32.xlu1 %v1208_v43 }
 0x3a1   : > { %1227 = vmax.xlane.f32.xlu0 %v1226_v49 }
 0x3a4   : > { %1212 = vmax.xlane.f32.xlu1 %v1211_v54 }
 0x3a8   : > { %1218 = vmax.xlane.f32.xlu1 %v1217_v59 }
 0x3ac   : > { %1224 = vmax.xlane.f32.xlu1 %v1223_v63 }
 0x3b0   : > { %1230 = vmax.xlane.f32.xlu1 %v1229_v1 }
 0x411   : > { %v1192_v3 = vpop.xlane.xlu1 %1191 }
 0x412   : > { %v1234_v4 = vsub.f32 %v3979_v31, %v1192_v3  ;;  %v1186_v5 = vpop.xlane.xlu0 %1185 }
 0x413   : > { %v1232_v7 = vsub.f32 %v3981_v32, %v1186_v5 }
 0x414   : > { %v1252_v8 = vmul.f32 1.442695, %v1234_v4 }
 0x415   : > { %v1248_v9 = vmul.f32 1.442695, %v1232_v7  ;;  %v1195_v11 = vpop.xlane.xlu1 %1194 }
 0x416   : > { %3365 = vpow2.f32 %v1252_v8  ;;  %v1235_v12 = vsub.f32 %v3985_v36, %v1195_v11 }
 0x417   : > { %3367 = vpow2.f32 %v1248_v9 }
 0x418   : > { %v1254_v18 = vmul.f32 1.442695, %v1235_v12 }
 0x419   : > { %v1189_v14 = vpop.xlane.xlu1 %1188 }
 0x41a   : > { %v1233_v17 = vsub.f32 %v3994_v50, %v1189_v14 }
 0x41c   : > { %v1250_v20 = vmul.f32 1.442695, %v1233_v17 }
 0x41d   : > { %v1204_v21 = vpop.xlane.xlu1 %1203 }
 0x41e   : > { %3369 = vpow2.f32 %v1250_v20  ;;  %v1238_v23 = vsub.f32 %v4001_v57, %v1204_v21 }
 0x41f   : > { %3371 = vpow2.f32 %v1254_v18 }
 0x420   : > { %v4087_v31 = vpop.eup %3365  ;;  %v1260_v32 = vmul.f32 1.442695, %v1238_v23 }
 0x421   : > { %v1198_v24 = vpop.xlane.xlu1 %1197  ;;  %v1216_v25 = vpop.xlane.xlu0 %1215  ;;  %v1286_v26 = vsel %vm1183_vm5, %v4087_v31, 0.0 }
 0x422   : > { %v4091_v27 = vpop.eup %3367  ;;  %3373 = vpow2.f32 %v1260_v32  ;;  %v1236_v36 = vsub.f32 %v4011_v2, %v1198_v24  ;;  %v1242_v50 = vsub.f32 %v4016_v6, %v1216_v25  ;;  %1287 = vadd.xlane.f32.xlu0 %v1286_v26 }
 0x423   : > { %v1280_v34 = vsel %vm1183_vm5, %v4091_v27, 0.0 }
 0x424   : > { %v1256_v29 = vmul.f32 1.442695, %v1236_v36  ;;  %v1268_v30 = vmul.f32 1.442695, %v1242_v50 }
 0x425   : > { %v1207_v57 = vpop.xlane.xlu1 %1206 }
 0x426   : > { %3375 = vpow2.f32 %v1256_v29  ;;  %1281 = vadd.xlane.f32.xlu0 %v1280_v34  ;;  %v1239_v39 = vsub.f32 %v4022_v10, %v1207_v57 }
 0x427   : > { %3377 = vpow2.f32 %v1268_v30 }
 0x428   : > { %v4097_v38 = vpop.eup %3369  ;;  %v1262_v54 = vmul.f32 1.442695, %v1239_v39 }
 0x429   : > { %v1201_v43 = vpop.xlane.xlu1 %1200  ;;  %v1283_v2 = vsel %vm1183_vm5, %v4097_v38, 0.0  ;;  %v4102_v49 = vpop.eup %3371 }
 0x42a   : > { %v1237_v6 = vsub.f32 %v4029_v19, %v1201_v43  ;;  %v1222_v52 = vpop.xlane.xlu0 %1221  ;;  %1284 = vadd.xlane.f32.xlu1 %v1283_v2  ;;  %v1289_v10 = vsel %vm1183_vm5, %v4102_v49, 0.0 }
 0x42b   : > { %v1244_v3 = vsub.f32 %v4040_v28, %v1222_v52 }
 0x42c   : > { %v4105_v53 = vpop.eup %3373  ;;  %v1258_v56 = vmul.f32 1.442695, %v1237_v6 }
 0x42d   : > { %v1210_v58 = vpop.xlane.xlu1 %1209  ;;  %v1298_v59 = vsel %vm1183_vm5, %v4105_v53, 0.0  ;;  %v1272_v11 = vmul.f32 1.442695, %v1244_v3 }
 0x42e   : > { %3379 = vpow2.f32 %v1258_v56  ;;  %v1240_v62 = vsub.f32 %v4044_v33, %v1210_v58  ;;  %1299 = vadd.xlane.f32.xlu0 %v1298_v59  ;;  %v1228_v63 = vpop.xlane.xlu0 %1227  ;;  %1290 = vadd.xlane.f32.xlu1 %v1289_v10 }
 0x42f   : > { %v1246_v19 = vsub.f32 %v4048_v37, %v1228_v63  ;;  %3381 = vpow2.f32 %v1262_v54 }
 0x430   : > { %v4113_v1 = vpop.eup %3375  ;;  %v1264_v4 = vmul.f32 1.442695, %v1240_v62 }
 0x431   : > { %v1276_v5 = vmul.f32 1.442695, %v1246_v19  ;;  %v1213_v7 = vpop.xlane.xlu1 %1212  ;;  %v1292_v8 = vsel %vm1183_vm5, %v4113_v1, 0.0  ;;  %v4118_v9 = vpop.eup %3377 }
 0x432   : > { %3383 = vpow2.f32 %v1264_v4  ;;  %v1241_v33 = vsub.f32 %v4055_v48, %v1213_v7  ;;  %1293 = vadd.xlane.f32.xlu0 %v1292_v8  ;;  %v1310_v14 = vsel %vm1183_vm5, %v4118_v9, 0.0 }
 0x433   : > { %3385 = vpow2.f32 %v1276_v5 }
 0x434   : > { %v1266_v37 = vmul.f32 1.442695, %v1241_v33 }
 0x435   : > { %v1219_v12 = vpop.xlane.xlu1 %1218 }
 0x436   : > { %3387 = vpow2.f32 %v1266_v37  ;;  %v1243_v28 = vsub.f32 %v4064_v55, %v1219_v12  ;;  %1311 = vadd.xlane.f32.xlu0 %v1310_v14 }
 0x437   : > { %3389 = vpow2.f32 %v1272_v11 }
 0x438   : > { %v4124_v17 = vpop.eup %3379  ;;  %v1270_v18 = vmul.f32 1.442695, %v1243_v28 }
 0x439   : > { %v1225_v20 = vpop.xlane.xlu1 %1224  ;;  %v1295_v48 = vsel %vm1183_vm5, %v4124_v17, 0.0  ;;  %v4128_v21 = vpop.eup %3381 }
 0x43a   : > { %3391 = vpow2.f32 %v1270_v18  ;;  %v1245_v23 = vsub.f32 %v4071_v60, %v1225_v20  ;;  %1296 = vadd.xlane.f32.xlu1 %v1295_v48  ;;  %v1301_v26 = vsel %vm1183_vm5, %v4128_v21, 0.0 }
 0x43c   : > { %v4131_v32 = vpop.eup %3383  ;;  %v1274_v24 = vmul.f32 1.442695, %v1245_v23 }
 0x43d   : > { %v1231_v25 = vpop.xlane.xlu1 %1230  ;;  %v1304_v55 = vsel %vm1183_vm5, %v4131_v32, 0.0  ;;  %v4137_v36 = vpop.eup %3385 }
 0x43e   : > { %3393 = vpow2.f32 %v1274_v24  ;;  %v1247_v50 = vsub.f32 %v4078_v0, %v1231_v25  ;;  %1305 = vadd.xlane.f32.xlu0 %v1304_v55  ;;  %1302 = vadd.xlane.f32.xlu1 %v1301_v26  ;;  %v1322_v30 = vsel %vm1183_vm5, %v4137_v36, 0.0 }
 0x440   : > { %v4140_v29 = vpop.eup %3387  ;;  %v1278_v60 = vmul.f32 1.442695, %v1247_v50 }
 0x441   : > { %v1307_v57 = vsel %vm1183_vm5, %v4140_v29, 0.0  ;;  %v4146_v34 = vpop.eup %3389 }
 0x442   : > { %3395 = vpow2.f32 %v1278_v60  ;;  %1323 = vadd.xlane.f32.xlu0 %v1322_v30  ;;  %1308 = vadd.xlane.f32.xlu1 %v1307_v57  ;;  %v1316_v0 = vsel %vm1183_vm5, %v4146_v34, 0.0 }
 0x444   : > { %v4148_v39 = vpop.eup %3391 }
 0x445   : > { %v1313_v43 = vsel %vm1183_vm5, %v4148_v39, 0.0 }
 0x446   : > { %1317 = vadd.xlane.f32.xlu0 %v1316_v0  ;;  %1314 = vadd.xlane.f32.xlu1 %v1313_v43 }
 0x448   : > { %v4154_v2 = vpop.eup %3393 }
 0x449   : > { %v1319_v6 = vsel %vm1183_vm5, %v4154_v2, 0.0 }
 0x44a   : > { %1320 = vadd.xlane.f32.xlu1 %v1319_v6 }
 0x44c   : > { %v4158_v52 = vpop.eup %3395 }
 0x44d   : > { %v1325_v54 = vsel %vm1183_vm5, %v4158_v52, 0.0 }
 0x44e   : > { %1326 = vadd.xlane.f32.xlu1 %v1325_v54 }
 0x45c   : > { %1368 = vrot.lane.b32.xlu0 %v3945_v61, %s3577_s30  ;;  %s2906_s30 = sshll.u32 %s3579_s1, 4  ;;  %s2907_s30 = int_to_ptr.vmem [resolvable:$true] %s2906_s30 }
 0x45d   : > { %p3504_p9 = scmp.lt.s32.totalorder %s2907_s30, %s2907_s30 }
 0x4af   : > { %v1288_v56 = vpop.xlane.xlu0 %1287 }
 0x4b3   : > { %v1282_v58 = vpop.xlane.xlu0 %1281 }
 0x4b4   : > { %3397 = vrcp.f32 %v1282_v58 }
 0x4b7   : > { %v1285_v59 = vpop.xlane.xlu1 %1284 }
 0x4b8   : > { %3399 = vrcp.f32 %v1285_v59 }
 0x4bb   : > { %v1300_v10 = vpop.xlane.xlu0 %1299  ;;  %v1291_v3 = vpop.xlane.xlu1 %1290 }
 0x4bc   : > { %3401 = vrcp.f32 %v1291_v3 }
 0x4be   : > { %v3398_v62 = vpop.eup %3397 }
 0x4bf   : > { %v1294_v63 = vpop.xlane.xlu0 %1293  ;;  %v1344_v4 = vmul.f32 %v3398_v62, %v4091_v27 }
 0x4c2   : > { %v3400_v19 = vpop.eup %3399 }
 0x4c3   : > { %v1345_v5 = vmul.f32 %v3400_v19, %v4097_v38  ;;  %v1312_v8 = vpop.xlane.xlu0 %1311 }
 0x4c5   : > { %v1360_v7 = vpack.c.bf16 %v1345_v5, %v1344_v4 }
 0x4c6   : > { %v3402_v14 = vpop.eup %3401 }
 0x4c7   : > { %3271 = vmatprep.mubr.msk.bf16.mxu0 %vm1183_vm5, %v1360_v7  ;;  %v1297_v33 = vpop.xlane.xlu1 %1296  ;;  %v1347_v48 = vmul.f32 %v3402_v14, %v4102_v49 }
 0x4c8   : > { %3403 = vrcp.f32 %v1297_v33 }
 0x4c9   : > { %3405 = vrcp.f32 %v1288_v56 }
 0x4ca   : > { %3407 = vrcp.f32 %v1294_v63 }
 0x4cb   : > { %v1306_v61 = vpop.xlane.xlu0 %1305  ;;  %v1303_v11 = vpop.xlane.xlu1 %1302 }
 0x4cc   : > { %3409 = vrcp.f32 %v1303_v11 }
 0x4cf   : > { %v1324_v37 = vpop.xlane.xlu0 %1323  ;;  %v1309_v12 = vpop.xlane.xlu1 %1308 }
 0x4d0   : > { %3411 = vrcp.f32 %v1309_v12 }
 0x4d1   : > { %3413 = vrcp.f32 %v1300_v10 }
 0x4d2   : > { %v3404_v38 = vpop.eup %3403  ;;  %3415 = vrcp.f32 %v1306_v61 }
 0x4d3   : > { %v1318_v27 = vpop.xlane.xlu0 %1317  ;;  %v1315_v28 = vpop.xlane.xlu1 %1314  ;;  %v1349_v25 = vmul.f32 %v3404_v38, %v4124_v17 }
 0x4d4   : > { %v3406_v18 = vpop.eup %3405  ;;  %3417 = vrcp.f32 %v1315_v28 }
 0x4d5   : > { %v3408_v20 = vpop.eup %3407  ;;  %v1346_v55 = vmul.f32 %v3406_v18, %v4087_v31 }
 0x4d6   : > { %v1348_v26 = vmul.f32 %v3408_v20, %v4113_v1  ;;  %v3410_v60 = vpop.eup %3409 }
 0x4d7   : > { %v1369_v23 = vpop.permute.xlu0 %1368  ;;  %v1321_v24 = vpop.xlane.xlu1 %1320  ;;  %v1361_v50 = vpack.c.bf16 %v1347_v48, %v1346_v55  ;;  %v1351_v31 = vmul.f32 %v3410_v60, %v4128_v21 }
 0x4d8   : > { %3269 = vmatprep.subr.bf16.mxu0 %v1369_v23  ;;  %3419 = vrcp.f32 %v1321_v24  ;;  %v1362_v30 = vpack.c.bf16 %v1349_v25, %v1348_v26 }
 0x4d9   : > { %3270 = vmatpush3.bf16.msra.mxu0 %v1369_v23  ;;  %3421 = vrcp.f32 %v1312_v8 }
 0x4da   : > { %v3412_v57 = vpop.eup %3411  ;;  %3423 = vrcp.f32 %v1318_v27 }
 0x4db   : > { %v3414_v49 = vpop.eup %3413  ;;  %v1327_v0 = vpop.xlane.xlu1 %1326  ;;  %v1353_v43 = vmul.f32 %v3412_v57, %v4140_v29 }
 0x4dc   : > { %3272 = vmatmul.mubr.msk.bf16.vlgmr.msra.gmra.mrb[4].mxu0 %vm1183_vm5, %v1361_v50  ;;  %v3416_v17 = vpop.eup %3415  ;;  %v1350_v1 = vmul.f32 %v3414_v49, %v4105_v53  ;;  %3425 = vrcp.f32 %v1327_v0 }
 0x4dd   : > { %3275 = vmatprep.mubr.msk.bf16.mxu0 %vm1183_vm5, %v1362_v30  ;;  %v1352_v6 = vmul.f32 %v3416_v17, %v4131_v32  ;;  %3427 = vrcp.f32 %v1324_v37 }
 0x4de   : > { %v1363_v54 = vpack.c.bf16 %v1351_v31, %v1350_v1  ;;  %v3418_v56 = vpop.eup %3417 }
 0x4df   : > { %v1364_v58 = vpack.c.bf16 %v1353_v43, %v1352_v6  ;;  %v1355_v21 = vmul.f32 %v3418_v56, %v4148_v39 }
 0x4e2   : > { %v3420_v59 = vpop.eup %3419 }
 0x4e3   : > { %v3422_v10 = vpop.eup %3421  ;;  %v1357_v29 = vmul.f32 %v3420_v59, %v4154_v2  ;;  %v3363_v2 = vld [vmem:[%s3843_s26] sm:$0xff]  }
 0x4e4   : > { %3276 = vmatmul.mubr.msk.bf16.gmra.mrb[8].mxu0 %vm1183_vm5, %v1363_v54  ;;  %v3424_v62 = vpop.eup %3423  ;;  %v1354_v53 = vmul.f32 %v3422_v10, %v4118_v9  ;;  %3288 = vmatpush3.bf16.msra.mxu1 %v3363_v2  ;;  %v3364_v9 = vld [vmem:[%s3843_s26 + $0x8] sm:$0xff]  }
 0x4e5   : > { %3279 = vmatprep.mubr.msk.bf16.mxu0 %vm1183_vm5, %v1364_v58  ;;  %v1356_v32 = vmul.f32 %v3424_v62, %v4146_v34  ;;  %3289 = vmatprep.subr.bf16.mxu1 %v3573_v13 }
 0x4e6   : > { %v1365_v63 = vpack.c.bf16 %v1355_v21, %v1354_v53  ;;  %v3426_v19 = vpop.eup %3425 }
 0x4e7   : > { %v1366_v3 = vpack.c.bf16 %v1357_v29, %v1356_v32  ;;  %v3428_v4 = vpop.eup %3427  ;;  %v1359_v5 = vmul.f32 %v3426_v19, %v4158_v52 }
 0x4e8   : > { %v1358_v7 = vmul.f32 %v3428_v4, %v4137_v36  ;;  %3290 = vmatpush3.bf16.msra.mxu1 %v3364_v9 }
 0x4ea   : > { %v1367_v39 = vpack.c.bf16 %v1359_v5, %v1358_v7 }
 0x4ec   : > { %3280 = vmatmul.mubr.msk.bf16.gmra.mrb[12].mxu0 %vm1183_vm5, %v1365_v63 }
 0x4ed   : > { %3283 = vmatprep.mubr.msk.bf16.mxu0 %vm1183_vm5, %v1366_v3 }
 0x4f4   : > { %3284 = vmatmul.mubr.msk.bf16.gmra.mrb[16].mxu0 %vm1183_vm5, %v1367_v39 }
 0x5af   : > { %v3273_v34 = vpop.f32.mrb[4].mxu0 }
 0x5b0   : > { %v1494_v8 = vmul.f32 %v3273_v34, %v3918_v41  ;;  %v1429_v33 = vpop.f32.mrb[5].mxu0 }
 0x5b1   : > { %v1492_v61 = vmul.f32 %v1429_v33, %v3915_v40  ;;  %v3274_v11 = vpop.f32.mrb[6].mxu0 }
 0x5b2   : > { %v1509_v52 = vsel %vm847_vm4, %v1494_v8, 0.0  ;;  %v1495_v36 = vmul.f32 %v3274_v11, %v3918_v41  ;;  %v1432_v37 = vpop.f32.mrb[7].mxu0 }
 0x5b3   : > { %v1508_v12 = vsel %vm847_vm4, %v1492_v61, 0.0  ;;  %v1493_v14 = vmul.f32 %v1432_v37, %v3915_v40 }
 0x5b4   : > { %v1510_v27 = vadd.f32 %v1509_v52, %v1508_v12  ;;  %v1524_v13 = vsel %vm847_vm4, %v1495_v36, 0.0 }
 0x5b5   : > { %v1523_v28 = vsel %vm847_vm4, %v1493_v14, 0.0 }
 0x5b6   : > { %v1525_v38 = vadd.f32 %v1524_v13, %v1523_v28 }
 0x5b7   : > { %v3277_v18 = vpop.f32.mrb[8].mxu0 }
 0x5b8   : > { %v1445_v20 = vpop.f32.mrb[9].mxu0  ;;  %v1498_v48 = vmul.f32 %v3277_v18, %v3924_v44  ;;  %v1654_v18 = vld [vmem:[%s3814_s0] sm:$0xff] }
 0x5b9   : > { %v1496_v23 = vmul.f32 %v1445_v20, %v3921_v42  ;;  %v3278_v24 = vpop.f32.mrb[10].mxu0  ;;  %v1662_v20 = vld [vmem:[%s3814_s0 + $0x40] sm:$0xff] }
 0x5ba   : > { %v1448_v25 = vpop.f32.mrb[11].mxu0  ;;  %v1499_v55 = vmul.f32 %v3278_v24, %v3924_v44  ;;  %v1513_v50 = vsel %vm847_vm4, %v1498_v48, 0.0  ;;  %v3128_v48 = vcombine.low %v1654_v18, %v1662_v20 }
 0x5bb   : > { %v1511_v41 = vsel %vm847_vm4, %v1496_v23, 0.0  ;;  %v1497_v40 = vmul.f32 %v1448_v25, %v3921_v42  ;;  %v3129_v23 = vcombine.high %v1654_v18, %v1662_v20 }
 0x5bc   : > { %v1512_v26 = vadd.f32 %v1511_v41, %v1510_v27  ;;  %v1528_v49 = vsel %vm847_vm4, %v1499_v55, 0.0 }
 0x5bd   : > { %v1526_v60 = vsel %vm847_vm4, %v1497_v40, 0.0  ;;  %1933 = vmatprep.subr.bf16.mxu0 %v3129_v23 }
 0x5be   : > { %v1527_v30 = vadd.f32 %v1526_v60, %v1525_v38  ;;  %v1514_v57 = vadd.f32 %v1513_v50, %v1512_v26  ;;  %1934 = vmatpush1.bf16.msra.mxu0 %v3128_v48 }
 0x5bf   : > { %v3281_v17 = vpop.f32.mrb[12].mxu0 }
 0x5c0   : > { %v1461_v0 = vpop.f32.mrb[13].mxu0  ;;  %v1529_v31 = vadd.f32 %v1528_v49, %v1527_v30  ;;  %v1502_v43 = vmul.f32 %v3281_v17, %v3930_v46  ;;  %v1655_v30 = vld [vmem:[%s3814_s0 + $0x8] sm:$0xff] }
 0x5c1   : > { %v1500_v1 = vmul.f32 %v1461_v0, %v3927_v45  ;;  %v3282_v6 = vpop.f32.mrb[14].mxu0  ;;  %v1670_v0 = vld [vmem:[%s3814_s0 + $0x80] sm:$0xff] }
 0x5c2   : > { %v1464_v44 = vpop.f32.mrb[15].mxu0  ;;  %v1503_v54 = vmul.f32 %v3282_v6, %v3930_v46  ;;  %v1517_v59 = vsel %vm847_vm4, %v1502_v43, 0.0  ;;  %v1671_v43 = vld [vmem:[%s3814_s0 + $0x88] sm:$0xff] }
 0x5c3   : > { %v1515_v42 = vsel %vm847_vm4, %v1500_v1, 0.0  ;;  %v1501_v56 = vmul.f32 %v1464_v44, %v3927_v45  ;;  %v1679_v44 = vld [vmem:[%s3814_s0 + $0xc8] sm:$0xff] }
 0x5c4   : > { %v1516_v58 = vadd.f32 %v1515_v42, %v1514_v57  ;;  %v1532_v29 = vsel %vm847_vm4, %v1503_v54, 0.0  ;;  %v1663_v57 = vld [vmem:[%s3814_s0 + $0x48] sm:$0xff]  ;;  %v3146_v42 = vcombine.low %v1671_v43, %v1679_v44  ;;  %v3147_v54 = vcombine.high %v1671_v43, %v1679_v44  ;;  %v1676_v43 = vld [vmem:[%s3814_s0 + $0xb0] sm:$0xff]  ;;  %v1685_v44 = vld [vmem:[%s3814_s0 + $0xf8] sm:$0xff] }
 0x5c5   : > { %v1530_v10 = vsel %vm847_vm4, %v1501_v56, 0.0  ;;  %v3131_v49 = vcombine.high %v1655_v30, %v1663_v57  ;;  %v3130_v17 = vcombine.low %v1655_v30, %v1663_v57  ;;  %v3578_v56 = vmov 0   ;;  %v1661_v30 = vld [vmem:[%s3814_s0 + $0x38] sm:$0xff] }
 0x5c6   : > { %v1531_v62 = vadd.f32 %v1530_v10, %v1529_v31  ;;  %v1518_v21 = vadd.f32 %v1517_v59, %v1516_v58  ;;  %v1678_v31 = vld [vmem:[%s3814_s0 + $0xc0] sm:$0xff]  ;;  %1965 = vmatprep.mubr.bf16.mxu0 %v3578_v56  ;;  %v1656_v58 = vld [vmem:[%s3814_s0 + $0x10] sm:$0xff]  ;;  %v1657_v10 = vld [vmem:[%s3814_s0 + $0x18] sm:$0xff] }
 0x5c7   : > { %v3285_v53 = vpop.f32.mrb[16].mxu0  ;;  %1976 = vmatprep.subr.bf16.mxu1 %v3131_v49  ;;  %v3144_v1 = vcombine.low %v1670_v0, %v1678_v31  ;;  %v3145_v6 = vcombine.high %v1670_v0, %v1678_v31  ;;  %v1664_v59 = vld [vmem:[%s3814_s0 + $0x50] sm:$0xff]  ;;  %v1669_v57 = vld [vmem:[%s3814_s0 + $0x78] sm:$0xff] }
 0x5c8   : > { %v1477_v32 = vpop.f32.mrb[17].mxu0  ;;  %v1533_v63 = vadd.f32 %v1532_v29, %v1531_v62  ;;  %v1506_v19 = vmul.f32 %v3285_v53, %v3936_v51  ;;  %v3132_v62 = vcombine.low %v1656_v58, %v1664_v59  ;;  %v1665_v29 = vld [vmem:[%s3814_s0 + $0x58] sm:$0xff]  ;;  %v3143_v31 = vcombine.high %v1661_v30, %v1669_v57 }
 0x5c9   : > { %v1504_v3 = vmul.f32 %v1477_v32, %v3933_v47  ;;  %v3286_v46 = vpop.f32.mrb[18].mxu0  ;;  %1935 = vmatprep.subr.bf16.mxu0 %v3145_v6  ;;  %v3134_v53 = vcombine.low %v1657_v10, %v1665_v29  ;;  %v3135_v32 = vcombine.high %v1657_v10, %v1665_v29  ;;  %v1677_v6 = vld [vmem:[%s3814_s0 + $0xb8] sm:$0xff] }
 0x5ca   : > { %v1480_v4 = vpop.f32.mrb[19].mxu0  ;;  %v1507_v5 = vmul.f32 %v3286_v46, %v3936_v51  ;;  %v1521_v2 = vsel %vm847_vm4, %v1506_v19, 0.0  ;;  %1936 = vmatpush1.bf16.msra.mxu0 %v3144_v1  ;;  %v1684_v1 = vld [vmem:[%s3814_s0 + $0xf0] sm:$0xff] }
 0x5cb   : > { %v1519_v45 = vsel %vm847_vm4, %v1504_v3, 0.0  ;;  %v1505_v7 = vmul.f32 %v1480_v4, %v3933_v47  ;;  %v3122_v47 = vld [vmem:[%s4574_s11] ss:$0 sm:$0xff] }
 0x5cc   : > { %v1520_v39 = vadd.f32 %v1519_v45, %v1518_v21  ;;  %v1536_v33 = vsel %vm847_vm4, %v1507_v5, 0.0  ;;  %v3133_v21 = vcombine.high %v1656_v58, %v1664_v59  ;;  %v3157_v58 = vcombine.high %v1676_v43, %v1684_v1 }
 0x5cd   : > { %v1534_v9 = vsel %vm847_vm4, %v1505_v7, 0.0  ;;  %v3159_v59 = vcombine.high %v1677_v6, %v1685_v44 }
 0x5ce   : > { %v1522_v34 = vadd.f32 %v1521_v2, %v1520_v39  ;;  %v1535_v8 = vadd.f32 %v1534_v9, %v1533_v63  ;;  %2019 = vmatprep.subr.bf16.mxu0 %v3133_v21  ;;  %v3126_v39 = vld [vmem:[%s740_s5] ss:$0 sm:$0xff]  ;;  %s4575_s5 = sld [smem:[#allocation15_spill]] }
 0x5d0   : > { %v1537_v61 = vadd.f32 %v1536_v33, %v1535_v8  ;;  %v3127_v8 = vld [vmem:[%s743_s7] ss:$0 sm:$0xff] }
 0x5d2   : > { %v1538_v11 = vpack.c.bf16 %v1537_v61, %v1522_v34  ;;  %v1672_v61 = vld [vmem:[%s3814_s0 + $0x90] sm:$0xff] }
 0x5d4   : > { %3292 = vmatmul.mubr.msk.bf16.vlgmr.msra.gmra.mrb[16].mxu1 %vm847_vm4, %v1538_v11  ;;  %v1680_v11 = vld [vmem:[%s3814_s0 + $0xd0] sm:$0xff]  ;;  %v2325_v10 = vld [vmem:[%s4575_s5] sm:$0xff]  ;;  %v2326_v21 = vld [vmem:[%s4575_s5 + $0x8] sm:$0xff] }
 0x5d5   : > { %1977 = vmatpush1.bf16.msra.mxu1 %v3130_v17  ;;  %2008 = vmatprep.mubr.bf16.mxu1 %v3578_v56  ;;  %v3148_v18 = vcombine.low %v1672_v61, %v1680_v11  ;;  %v2334_v29 = vld [vmem:[%s4575_s5 + $0x48] sm:$0xff] }
 0x5d6   : > { %1978 = vmatprep.subr.bf16.mxu1 %v3147_v54  ;;  %v3142_v54 = vcombine.low %v1661_v30, %v1669_v57 }
 0x5d9   : > { %1979 = vmatpush1.bf16.msra.mxu1 %v3146_v42 }
 0x5da   : > { %2062 = vmatprep.subr.bf16.mxu1 %v3135_v32  ;;  %v3158_v32 = vcombine.low %v1677_v6, %v1685_v44 }
 0x6a7   : > { %v1599_v51 = vpop.f32.mrb[16].mxu1 }
 0x6a8   : > { %v1600_v52 = vadd.f32 %v3122_v47, %v1599_v51  ;;  %v3293_v36 = vpop.f32.mrb[17].mxu1  ;;  %v1681_v51 = vld [vmem:[%s3814_s0 + $0xd8] sm:$0xff] }
 0x6a9   : > { %v1602_v37 = vpop.f32.mrb[18].mxu1 }
 0x6aa   : > { %v1603_v12 = vadd.f32 %v3122_v47, %v1602_v37  ;;  %v3294_v14 = vpop.f32.mrb[19].mxu1  ;;  %v1606_v27 = vadd.f32 %v1600_v52, %v3892_v15  ;;  %v1673_v47 = vld [vmem:[%s3814_s0 + $0x98] sm:$0xff] }
 0x6ab   : > { %v3151_v14 = vcombine.high %v1673_v47, %v1681_v51  ;;  %v3150_v20 = vcombine.low %v1673_v47, %v1681_v51 }
 0x6ac   : > { %v1610_v13 = vsel %vm847_vm4, %v1606_v27, 0.0  ;;  %v1607_v28 = vadd.f32 %v1603_v12, %v3894_v16  ;;  %v3149_v12 = vcombine.high %v1672_v61, %v1680_v11  ;;  %v4328_v11 = vld [vmem:[%s4575_s5 + $0x58] sm:$0xff] }
 0x6ad   : > { %1611 = vadd.xlane.f32.xlu1 %v1610_v13  ;;  %v1666_v13 = vld [vmem:[%s3814_s0 + $0x60] sm:$0xff] }
 0x6ae   : > { %v1613_v38 = vsel %vm847_vm4, %v1607_v28, 0.0 }
 0x6b1   : > { %1614 = vadd.xlane.f32.xlu1 %v1613_v38  ;;  %v1667_v38 = vld [vmem:[%s3814_s0 + $0x68] sm:$0xff] }
 0x73a   : > { %v1612_v24 = vpop.xlane.xlu1 %1611 }
 0x73b   : > { %v1617_v25 = vmul.f32 0.03125, %v1612_v24  ;;  %v1674_v24 = vld [vmem:[%s3814_s0 + $0xa0] sm:$0xff] }
 0x73d   : > { %v1619_v15 = vsub.f32 %v1606_v27, %v1617_v25  ;;  %v1658_v27 = vld [vmem:[%s3814_s0 + $0x20] sm:$0xff] }
 0x73e   : > { %v1615_v41 = vpop.xlane.xlu1 %1614  ;;  %v3137_v48 = vcombine.high %v1658_v27, %v1666_v13  ;;  %v1682_v25 = vld [vmem:[%s3814_s0 + $0xe0] sm:$0xff] }
 0x73f   : > { %v1618_v55 = vmul.f32 0.03125, %v1615_v41  ;;  %v1621_v16 = vmul.f32 %v1619_v15, %v1619_v15  ;;  %v1683_v41 = vld [vmem:[%s3814_s0 + $0xe8] sm:$0xff]  ;;  %v3152_v49 = vcombine.low %v1674_v24, %v1682_v25 }
 0x741   : > { %v1620_v40 = vsub.f32 %v1607_v28, %v1618_v55  ;;  %v1623_v26 = vsel %vm847_vm4, %v1621_v16, 0.0  ;;  %v1659_v28 = vld [vmem:[%s3814_s0 + $0x28] sm:$0xff]  ;;  %v3136_v55 = vcombine.low %v1658_v27, %v1666_v13  ;;  %v1696_v27 = vsub.s32 1, %v3900_v22 }
 0x742   : > { %1624 = vadd.xlane.f32.xlu1 %v1623_v26  ;;  %v3139_v23 = vcombine.high %v1659_v28, %v1667_v38  ;;  %v3138_v16 = vcombine.low %v1659_v28, %v1667_v38  ;;  %v1704_v13 = vsub.s32 3, %v3900_v22 }
 0x743   : > { %v1622_v50 = vmul.f32 %v1620_v40, %v1620_v40 }
 0x745   : > { %v1626_v60 = vsel %vm847_vm4, %v1622_v50, 0.0  ;;  %v1660_v50 = vld [vmem:[%s3814_s0 + $0x30] sm:$0xff] }
 0x746   : > { %1627 = vadd.xlane.f32.xlu1 %v1626_v60  ;;  %v1668_v60 = vld [vmem:[%s3814_s0 + $0x70] sm:$0xff] }
 0x747   : > { %v3141_v0 = vcombine.high %v1660_v50, %v1668_v60  ;;  %v3140_v42 = vcombine.low %v1660_v50, %v1668_v60 }
 0x7cf   : > { %v1625_v63 = vpop.xlane.xlu1 %1624 }
 0x7d0   : > { %v1629_v19 = vmul.f32 0.03125, %v1625_v63 }
 0x7d2   : > { %v1631_v3 = vadd.f32 1e-05, %v1629_v19  ;;  %v3172_v19 = vcombine.high %v2326_v21, %v2334_v29 }
 0x7d3   : > { %v1628_v46 = vpop.xlane.xlu1 %1627 }
 0x7d4   : > { %3429 = vrsqrt.f32 %v1631_v3  ;;  %v1630_v4 = vmul.f32 0.03125, %v1628_v46  ;;  %v3171_v46 = vcombine.low %v2326_v21, %v2334_v29  ;;  %v4363_v29 = vld [vmem:[%s4575_s5 + $0x90] sm:$0xff] }
 0x7d6   : > { %v1632_v45 = vadd.f32 1e-05, %v1630_v4  ;;  %v2341_v4 = vld [vmem:[%s4575_s5 + $0x80] sm:$0xff] }
 0x7d8   : > { %3431 = vrsqrt.f32 %v1632_v45  ;;  %v2342_v45 = vld [vmem:[%s4575_s5 + $0x88] sm:$0xff] }
 0x7de   : > { %v3430_v5 = vpop.eup %3429 }
 0x7df   : > { %v1635_v7 = vmul.f32 %v3430_v5, %v1619_v15  ;;  %v1675_v15 = vld [vmem:[%s3814_s0 + $0xa8] sm:$0xff] }
 0x7e0   : > { %v3155_v26 = vcombine.high %v1675_v15, %v1683_v41  ;;  %v3154_v17 = vcombine.low %v1675_v15, %v1683_v41  ;;  %v1712_v15 = vsub.s32 5, %v3900_v22  ;;  %v1720_v41 = vsub.s32 7, %v3900_v22 }
 0x7e1   : > { %v1643_v9 = vmul.f32 %v3126_v39, %v1635_v7  ;;  %v2350_v7 = vld [vmem:[%s4575_s5 + $0xc8] sm:$0xff] }
 0x7e2   : > { %v3432_v2 = vpop.eup %3431 }
 0x7e3   : > { %v1636_v34 = vmul.f32 %v3432_v2, %v1620_v40  ;;  %v4262_v52 = vadd.f32 %v3127_v8, %v1643_v9  ;;  %v3153_v40 = vcombine.high %v1674_v24, %v1682_v25  ;;  %v3187_v2 = vcombine.low %v2342_v45, %v2350_v7 }
 0x7e4   : > { %v3188_v9 = vcombine.high %v2342_v45, %v2350_v7 }
 0x7e5   : > { %v1644_v33 = vmul.f32 %v3126_v39, %v1636_v34  ;;  %v4317_v34 = vld [vmem:[%s4575_s5 + $0x10] sm:$0xff] }
 0x7e7   : > { %v4264_v36 = vadd.f32 %v3127_v8, %v1644_v33  ;;  %v4320_v8 = vld [vmem:[%s4575_s5 + $0x50] sm:$0xff]  ;;  %v4323_v33 = vld [vmem:[%s4575_s5 + $0x18] sm:$0xff] }
 0x7e8   : > { %v3174_v61 = vcombine.high %v4317_v34, %v4320_v8  ;;  %v3173_v47 = vcombine.low %v4317_v34, %v4320_v8  ;;  %v3175_v51 = vcombine.low %v4323_v33, %v4328_v11  ;;  %v4399_v34 = vld [vmem:[%s4575_s5 + $0x60] sm:$0xff] }
 0x7e9   : > { %v4268_v37 = vpack.c.bf16 %v4264_v36, %v4262_v52 }
 0x7eb   : > { %3160 = vmatmul.mubr.msk.bf16.vlgmr.msra.gmra.mrb[20].mxu0 %vm847_vm4, %v4268_v37  ;;  %3161 = vmatmul.mubr.msk.bf16.vlgmr.msra.gmra.mrb[20].mxu1 %vm847_vm4, %v4268_v37 }
 0x7ec   : > { %2020 = vmatpush1.bf16.msra.mxu0 %v3132_v62  ;;  %2063 = vmatpush1.bf16.msra.mxu1 %v3134_v53  ;;  %v2333_v62 = vld [vmem:[%s4575_s5 + $0x40] sm:$0xff]  ;;  %v3156_v53 = vcombine.low %v1676_v43, %v1684_v1 }
 0x7ed   : > { %2021 = vmatprep.subr.bf16.mxu0 %v3149_v12  ;;  %2064 = vmatprep.subr.bf16.mxu1 %v3151_v14  ;;  %v3170_v63 = vcombine.high %v2325_v10, %v2333_v62  ;;  %v3169_v3 = vcombine.low %v2325_v10, %v2333_v62  ;;  %v1700_v12 = vsub.s32 2, %v3900_v22  ;;  %v1686_v14 = vld [vmem:[%s3852_s25] sm:$0xff] }
 0x7ee   : > { %2051 = vmatprep.mubr.bf16.mxu0 %v3578_v56  ;;  %2094 = vmatprep.mubr.bf16.mxu1 %v3578_v56  ;;  %v1693_v28 = vrot.slane %v1686_v14, %v3907_v35 }
 0x7ef   : > { %v1701_v38 = vrot.slane %v1686_v14, %v1700_v12 }
 0x7f0   : > { %2022 = vmatpush1.bf16.msra.mxu0 %v3148_v18  ;;  %2065 = vmatpush1.bf16.msra.mxu1 %v3150_v20  ;;  %v1697_v18 = vrot.slane %v1686_v14, %v1696_v27  ;;  %v1705_v20 = vrot.slane %v1686_v14, %v1704_v13 }
 0x7f1   : > { %2105 = vmatprep.subr.bf16.mxu0 %v3137_v48  ;;  %2148 = vmatprep.subr.bf16.mxu1 %v3139_v23  ;;  %v1708_v48 = vsub.s32 4, %v3900_v22  ;;  %v1716_v23 = vsub.s32 6, %v3900_v22  ;;  %v2353_v22 = vld [vmem:[%s4575_s5 + $0xe0] sm:$0xff] }
 0x7f3   : > { %3162 = vmatmul.mubr.msk.bf16.vlgmr.msra.gmra.mrb[24].mxu0 %vm847_vm4, %v4268_v37  ;;  %3163 = vmatmul.mubr.msk.bf16.vlgmr.msra.gmra.mrb[24].mxu1 %vm847_vm4, %v4268_v37  ;;  %v1709_v43 = vrot.slane %v1686_v14, %v1708_v48  ;;  %v1717_v1 = vrot.slane %v1686_v14, %v1716_v23 }
 0x7f4   : > { %2106 = vmatpush1.bf16.msra.mxu0 %v3136_v55  ;;  %2149 = vmatpush1.bf16.msra.mxu1 %v3138_v16 }
 0x7f5   : > { %2107 = vmatprep.subr.bf16.mxu0 %v3153_v40  ;;  %2150 = vmatprep.subr.bf16.mxu1 %v3155_v26 }
 0x7f6   : > { %2137 = vmatprep.mubr.bf16.mxu0 %v3578_v56  ;;  %2180 = vmatprep.mubr.bf16.mxu1 %v3578_v56 }
 0x7f8   : > { %2108 = vmatpush1.bf16.msra.mxu0 %v3152_v49  ;;  %2151 = vmatpush1.bf16.msra.mxu1 %v3154_v17 }
 0x7f9   : > { %2191 = vmatprep.subr.bf16.mxu0 %v3141_v0  ;;  %2234 = vmatprep.subr.bf16.mxu1 %v3143_v31 }
 0x7fb   : > { %3164 = vmatmul.mubr.msk.bf16.vlgmr.msra.gmra.mrb[28].mxu0 %vm847_vm4, %v4268_v37  ;;  %3165 = vmatmul.mubr.msk.bf16.vlgmr.msra.gmra.mrb[28].mxu1 %vm847_vm4, %v4268_v37 }
 0x7fc   : > { %2192 = vmatpush1.bf16.msra.mxu0 %v3140_v42  ;;  %2235 = vmatpush1.bf16.msra.mxu1 %v3142_v54  ;;  %v1713_v42 = vrot.slane %v1686_v14, %v1712_v15  ;;  %v1721_v54 = vrot.slane %v1686_v14, %v1720_v41 }
 0x7fd   : > { %2193 = vmatprep.subr.bf16.mxu0 %v3157_v58  ;;  %2236 = vmatprep.subr.bf16.mxu1 %v3159_v59  ;;  %v4360_v58 = vld [vmem:[%s3852_s25 + $0x8] sm:$0xff] }
 0x7fe   : > { %2223 = vmatprep.mubr.bf16.mxu0 %v3578_v56  ;;  %2266 = vmatprep.mubr.bf16.mxu1 %v3578_v56  ;;  %v2349_v56 = vld [vmem:[%s4575_s5 + $0xc0] sm:$0xff] }
 0x7ff   : > { %v3186_v5 = vcombine.high %v2341_v4, %v2349_v56  ;;  %v3185_v39 = vcombine.low %v2341_v4, %v2349_v56  ;;  %v4372_v4 = vld [vmem:[%s4575_s5 + $0xd8] sm:$0xff] }
 0x800   : > { %2194 = vmatpush1.bf16.msra.mxu0 %v3156_v53  ;;  %2237 = vmatpush1.bf16.msra.mxu1 %v3158_v32  ;;  %v4366_v53 = vld [vmem:[%s4575_s5 + $0xd0] sm:$0xff] }
 0x801   : > { %2524 = vmatprep.subr.bf16.mxu0 %v3170_v63  ;;  %2565 = vmatprep.subr.bf16.mxu1 %v3172_v19 }
 0x803   : > { %3166 = vmatmul.mubr.msk.bf16.vlgmr.msra.gmra.mrb[32].mxu0 %vm847_vm4, %v4268_v37  ;;  %3167 = vmatmul.mubr.msk.bf16.vlgmr.msra.gmra.mrb[32].mxu1 %vm847_vm4, %v4268_v37  ;;  %v3176_v37 = vcombine.high %v4323_v33, %v4328_v11  ;;  %v4402_v11 = vld [vmem:[%s4575_s5 + $0x28] sm:$0xff] }
 0x809   : > { %2525 = vmatpush1.bf16.xpose.msra.mxu0 %v3169_v3  ;;  %2566 = vmatpush1.bf16.xpose.msra.mxu1 %v3171_v46  ;;  %v4369_v46 = vld [vmem:[%s4575_s5 + $0x98] sm:$0xff] }
 0x80a   : > { %2526 = vmatprep.subr.bf16.mxu0 %v3186_v5  ;;  %2567 = vmatprep.subr.bf16.mxu1 %v3188_v9  ;;  %v1725_v9 = vrot.slane %v4360_v58, %v3907_v35  ;;  %v1733_v35 = vrot.slane %v4360_v58, %v1700_v12  ;;  %v1737_v12 = vrot.slane %v4360_v58, %v1704_v13 }
 0x811   : > { %2527 = vmatpush1.bf16.xpose.msra.mxu0 %v3185_v39  ;;  %2568 = vmatpush1.bf16.xpose.msra.mxu1 %v3187_v2 }
 0x812   : > { %2606 = vmatprep.subr.bf16.mxu0 %v3174_v61  ;;  %2647 = vmatprep.subr.bf16.mxu1 %v3176_v37 }
 0x8be   : > { %v1967_v24 = vpop.f32.mrb[20].mxu0  ;;  %v2010_v25 = vpop.f32.mrb[20].mxu1 }
 0x8bf   : > { %v1968_v55 = vadd.f32 %v1967_v24, %v1693_v28  ;;  %v2011_v16 = vadd.f32 %v2010_v25, %v1701_v38  ;;  %v1969_v40 = vpop.f32.mrb[21].mxu0  ;;  %v2012_v26 = vpop.f32.mrb[21].mxu1 }
 0x8c0   : > { %v1970_v50 = vadd.f32 %v1969_v40, %v1697_v18  ;;  %v2013_v60 = vadd.f32 %v2012_v26, %v1705_v20  ;;  %v1971_v30 = vpop.f32.mrb[22].mxu0  ;;  %v2014_v57 = vpop.f32.mrb[22].mxu1 }
 0x8c1   : > { %v1972_v49 = vadd.f32 %v1971_v30, %v1693_v28  ;;  %v2015_v17 = vadd.f32 %v2014_v57, %v1701_v38  ;;  %v1973_v0 = vpop.f32.mrb[23].mxu0  ;;  %v2016_v31 = vpop.f32.mrb[23].mxu1  ;;  %v2277_v59 = vmax.f32 %v1968_v55, 0.0  ;;  %v2279_v10 = vmax.f32 %v2011_v16, 0.0 }
 0x8c2   : > { %v1974_v6 = vadd.f32 %v1973_v0, %v1697_v18  ;;  %v2017_v44 = vadd.f32 %v2016_v31, %v1705_v20  ;;  %v2278_v32 = vmax.f32 %v1970_v50, 0.0  ;;  %v2280_v63 = vmax.f32 %v2013_v60, 0.0  ;;  %v4396_v31 = vld [vmem:[%s4575_s5 + $0x20] sm:$0xff] }
 0x8c3   : > { %v2293_v62 = vmax.f32 %v1972_v49, 0.0  ;;  %v2295_v21 = vmax.f32 %v2015_v17, 0.0  ;;  %v3190_v38 = vcombine.high %v4363_v29, %v4366_v53  ;;  %v3192_v18 = vcombine.high %v4369_v46, %v4372_v4 }
 0x8c4   : > { %v2294_v19 = vmax.f32 %v1974_v6, 0.0  ;;  %v2296_v3 = vmax.f32 %v2017_v44, 0.0  ;;  %v1729_v60 = vrot.slane %v4360_v58, %v1696_v27 }
 0x8c5   : > { %v2309_v56 = vpack.c.bf16 %v2293_v62, %v2277_v59  ;;  %v2311_v45 = vpack.c.bf16 %v2295_v21, %v2279_v10  ;;  %v3189_v59 = vcombine.low %v4363_v29, %v4366_v53  ;;  %v3191_v10 = vcombine.low %v4369_v46, %v4372_v4 }
 0x8c6   : > { %v2310_v5 = vpack.c.bf16 %v2294_v19, %v2278_v32  ;;  %v2312_v7 = vpack.c.bf16 %v2296_v3, %v2280_v63  ;;  %v2053_v39 = vpop.f32.mrb[24].mxu0  ;;  %v2096_v2 = vpop.f32.mrb[24].mxu1  ;;  %v3178_v19 = vcombine.high %v4396_v31, %v4399_v34  ;;  %v1741_v29 = vrot.slane %v4360_v58, %v1708_v48 }
 0x8c7   : > { %v2054_v61 = vadd.f32 %v2053_v39, %v1709_v43  ;;  %v2097_v37 = vadd.f32 %v2096_v2, %v1717_v1  ;;  %v2055_v14 = vpop.f32.mrb[25].mxu0  ;;  %v2098_v28 = vpop.f32.mrb[25].mxu1  ;;  %v1749_v2 = vrot.slane %v4360_v58, %v1716_v23  ;;  %v1753_v48 = vrot.slane %v4360_v58, %v1720_v41 }
 0x8c8   : > { %v2056_v20 = vadd.f32 %v2055_v14, %v1713_v42  ;;  %v2099_v24 = vadd.f32 %v2098_v28, %v1721_v54  ;;  %v2057_v25 = vpop.f32.mrb[26].mxu0  ;;  %v2100_v55 = vpop.f32.mrb[26].mxu1  ;;  %2556 = vmatprep.mubr.bf16.mxu0 %v2310_v5  ;;  %2597 = vmatprep.mubr.bf16.mxu1 %v2312_v7 }
 0x8c9   : > { %v2058_v16 = vadd.f32 %v2057_v25, %v1709_v43  ;;  %v2101_v40 = vadd.f32 %v2100_v55, %v1717_v1  ;;  %v2059_v26 = vpop.f32.mrb[27].mxu0  ;;  %v2102_v50 = vpop.f32.mrb[27].mxu1  ;;  %2557 = vmatmul.mubr.bf16.vlgmr.msra.gmra.mrb[36].mxu0 %v2309_v56  ;;  %2598 = vmatmul.mubr.bf16.vlgmr.msra.gmra.mrb[36].mxu1 %v2311_v45  ;;  %v2281_v49 = vmax.f32 %v2054_v61, 0.0  ;;  %v2283_v17 = vmax.f32 %v2097_v37, 0.0  ;;  %v2345_v25 = vld [vmem:[%s4575_s5 + $0xa0] sm:$0xff] }
 0x8ca   : > { %v2060_v30 = vadd.f32 %v2059_v26, %v1713_v42  ;;  %v2103_v57 = vadd.f32 %v2102_v50, %v1721_v54  ;;  %2607 = vmatpush1.bf16.xpose.msra.mxu0 %v3173_v47  ;;  %2648 = vmatpush1.bf16.xpose.msra.mxu1 %v3175_v51  ;;  %v2282_v8 = vmax.f32 %v2056_v20, 0.0  ;;  %v2284_v47 = vmax.f32 %v2099_v24, 0.0  ;;  %v4405_v51 = vld [vmem:[%s4575_s5 + $0x68] sm:$0xff] }
 0x8cb   : > { %v2297_v0 = vmax.f32 %v2058_v16, 0.0  ;;  %v2299_v27 = vmax.f32 %v2101_v40, 0.0  ;;  %2608 = vmatprep.subr.bf16.mxu0 %v3190_v38  ;;  %2649 = vmatprep.subr.bf16.mxu1 %v3192_v18  ;;  %v3180_v3 = vcombine.high %v4402_v11, %v4405_v51  ;;  %v1745_v61 = vrot.slane %v4360_v58, %v1712_v15  ;;  %v2346_v16 = vld [vmem:[%s4575_s5 + $0xa8] sm:$0xff] }
 0x8cc   : > { %v2298_v43 = vmax.f32 %v2060_v30, 0.0  ;;  %v2300_v33 = vmax.f32 %v2103_v57, 0.0  ;;  %v2354_v40 = vld [vmem:[%s4575_s5 + $0xe8] sm:$0xff] }
 0x8cd   : > { %v4407_v1 = vpack.c.bf16 %v2297_v0, %v2281_v49  ;;  %v4409_v13 = vpack.c.bf16 %v2299_v27, %v2283_v17  ;;  %v3179_v17 = vcombine.low %v4402_v11, %v4405_v51 }
 0x8ce   : > { %v2314_v6 = vpack.c.bf16 %v2298_v43, %v2282_v8  ;;  %v2316_v44 = vpack.c.bf16 %v2300_v33, %v2284_v47  ;;  %v2139_v42 = vpop.f32.mrb[28].mxu0  ;;  %v2182_v54 = vpop.f32.mrb[28].mxu1  ;;  %v3194_v43 = vcombine.high %v2345_v25, %v2353_v22  ;;  %v3196_v33 = vcombine.high %v2346_v16, %v2354_v40 }
 0x8cf   : > { %v2140_v62 = vadd.f32 %v2139_v42, %v1725_v9  ;;  %v2183_v21 = vadd.f32 %v2182_v54, %v1733_v35  ;;  %v2141_v32 = vpop.f32.mrb[29].mxu0  ;;  %v2184_v63 = vpop.f32.mrb[29].mxu1 }
 0x8d0   : > { %v2142_v56 = vadd.f32 %v2141_v32, %v1729_v60  ;;  %v2185_v45 = vadd.f32 %v2184_v63, %v1737_v12  ;;  %v2143_v5 = vpop.f32.mrb[30].mxu0  ;;  %v2186_v7 = vpop.f32.mrb[30].mxu1  ;;  %2638 = vmatprep.mubr.bf16.mxu0 %v2314_v6  ;;  %2679 = vmatprep.mubr.bf16.mxu1 %v2316_v44  ;;  %v2331_v32 = vld [vmem:[%s4575_s5 + $0x30] sm:$0xff] }
 0x8d1   : > { %v2144_v53 = vadd.f32 %v2143_v5, %v1725_v9  ;;  %v2187_v46 = vadd.f32 %v2186_v7, %v1733_v35  ;;  %v2145_v4 = vpop.f32.mrb[31].mxu0  ;;  %v2188_v39 = vpop.f32.mrb[31].mxu1  ;;  %v2285_v9 = vmax.f32 %v2140_v62, 0.0  ;;  %v2287_v28 = vmax.f32 %v2183_v21, 0.0  ;;  %v2339_v63 = vld [vmem:[%s4575_s5 + $0x70] sm:$0xff] }
 0x8d2   : > { %v2146_v37 = vadd.f32 %v2145_v4, %v1729_v60  ;;  %v2189_v14 = vadd.f32 %v2188_v39, %v1737_v12  ;;  %2609 = vmatpush1.bf16.xpose.msra.mxu0 %v3189_v59  ;;  %2650 = vmatpush1.bf16.xpose.msra.mxu1 %v3191_v10  ;;  %v2286_v18 = vmax.f32 %v2142_v56, 0.0  ;;  %v2288_v15 = vmax.f32 %v2185_v45, 0.0  ;;  %v2332_v56 = vld [vmem:[%s4575_s5 + $0x38] sm:$0xff]  ;;  %v2347_v39 = vld [vmem:[%s4575_s5 + $0xb0] sm:$0xff] }
 0x8d3   : > { %v2301_v38 = vmax.f32 %v2144_v53, 0.0  ;;  %v2303_v23 = vmax.f32 %v2187_v46, 0.0  ;;  %2688 = vmatprep.subr.bf16.mxu0 %v3178_v19  ;;  %2729 = vmatprep.subr.bf16.mxu1 %v3180_v3  ;;  %v3177_v60 = vcombine.low %v4396_v31, %v4399_v34  ;;  %v2340_v45 = vld [vmem:[%s4575_s5 + $0x78] sm:$0xff]  ;;  %v3195_v53 = vcombine.low %v2346_v16, %v2354_v40 }
 0x8d4   : > { %v2302_v20 = vmax.f32 %v2146_v37, 0.0  ;;  %v2304_v24 = vmax.f32 %v2189_v14, 0.0  ;;  %v3182_v46 = vcombine.high %v2331_v32, %v2339_v63  ;;  %v3184_v4 = vcombine.high %v2332_v56, %v2340_v45  ;;  %v2348_v37 = vld [vmem:[%s4575_s5 + $0xb8] sm:$0xff] }
 0x8d5   : > { %v4432_v55 = vpack.c.bf16 %v2301_v38, %v2285_v9  ;;  %v4434_v35 = vpack.c.bf16 %v2303_v23, %v2287_v28  ;;  %v2356_v14 = vld [vmem:[%s4575_s5 + $0xf8] sm:$0xff] }
 0x8d6   : > { %v2318_v41 = vpack.c.bf16 %v2302_v20, %v2286_v18  ;;  %v2320_v58 = vpack.c.bf16 %v2304_v24, %v2288_v15  ;;  %v2225_v26 = vpop.f32.mrb[32].mxu0  ;;  %v2268_v50 = vpop.f32.mrb[32].mxu1  ;;  %v3200_v28 = vcombine.high %v2348_v37, %v2356_v14  ;;  %v3199_v23 = vcombine.low %v2348_v37, %v2356_v14  ;;  %v3168_v18 = vld [vmem:[%s737_s19] ss:$0 sm:$0xff] }
 0x8d7   : > { %v2226_v30 = vadd.f32 %v2225_v26, %v1741_v29  ;;  %v2269_v57 = vadd.f32 %v2268_v50, %v1749_v2  ;;  %v2227_v12 = vpop.f32.mrb[33].mxu0  ;;  %v2270_v49 = vpop.f32.mrb[33].mxu1 }
 0x8d8   : > { %v2228_v0 = vadd.f32 %v2227_v12, %v1745_v61  ;;  %v2271_v27 = vadd.f32 %v2270_v49, %v1753_v48  ;;  %v2229_v8 = vpop.f32.mrb[34].mxu0  ;;  %v2272_v47 = vpop.f32.mrb[34].mxu1 }
 0x8d9   : > { %v2230_v6 = vadd.f32 %v2229_v8, %v1741_v29  ;;  %v2273_v44 = vadd.f32 %v2272_v47, %v1749_v2  ;;  %2639 = vmatmul.mubr.bf16.vlgmr.msra.gmra.mrb[40].mxu0 %v4407_v1  ;;  %2680 = vmatmul.mubr.bf16.vlgmr.msra.gmra.mrb[40].mxu1 %v4409_v13  ;;  %v2231_v31 = vpop.f32.mrb[35].mxu0  ;;  %v2274_v34 = vpop.f32.mrb[35].mxu1  ;;  %v2289_v11 = vmax.f32 %v2226_v30, 0.0  ;;  %v2291_v51 = vmax.f32 %v2269_v57, 0.0  ;;  %v2355_v2 = vld [vmem:[%s4575_s5 + $0xf0] sm:$0xff] }
 0x8da   : > { %v2232_v42 = vadd.f32 %v2231_v31, %v1745_v61  ;;  %v2275_v54 = vadd.f32 %v2274_v34, %v1753_v48  ;;  %2689 = vmatpush1.bf16.xpose.msra.mxu0 %v3177_v60  ;;  %2720 = vmatprep.mubr.bf16.mxu0 %v2318_v41  ;;  %v2290_v62 = vmax.f32 %v2228_v0, 0.0  ;;  %v2292_v1 = vmax.f32 %v2271_v27, 0.0 }
 0x8db   : > { %v2305_v59 = vmax.f32 %v2230_v6, 0.0  ;;  %v2307_v10 = vmax.f32 %v2273_v44, 0.0  ;;  %2730 = vmatpush1.bf16.xpose.msra.mxu1 %v3179_v17  ;;  %2761 = vmatprep.mubr.bf16.mxu1 %v2320_v58  ;;  %v3193_v29 = vcombine.low %v2345_v25, %v2353_v22  ;;  %v3181_v61 = vcombine.low %v2331_v32, %v2339_v63 }
 0x8dc   : > { %v2306_v21 = vmax.f32 %v2232_v42, 0.0  ;;  %v2308_v13 = vmax.f32 %v2275_v54, 0.0  ;;  %2690 = vmatprep.subr.bf16.mxu0 %v3194_v43  ;;  %2731 = vmatprep.subr.bf16.mxu1 %v3196_v33  ;;  %v3183_v48 = vcombine.low %v2332_v56, %v2340_v45  ;;  %v3198_v9 = vcombine.high %v2347_v39, %v2355_v2 }
 0x8dd   : > { %v2321_v19 = vpack.c.bf16 %v2305_v59, %v2289_v11  ;;  %v2323_v3 = vpack.c.bf16 %v2307_v10, %v2291_v51  ;;  %v3197_v38 = vcombine.low %v2347_v39, %v2355_v2 }
 0x8de   : > { %v2322_v5 = vpack.c.bf16 %v2306_v21, %v2290_v62  ;;  %v2324_v7 = vpack.c.bf16 %v2308_v13, %v2292_v1 }
 0x8e2   : > { %2691 = vmatpush1.bf16.xpose.msra.mxu0 %v3193_v29 }
 0x8e3   : > { %2732 = vmatpush1.bf16.xpose.msra.mxu1 %v3195_v53  ;;  %2770 = vmatprep.subr.bf16.mxu0 %v3182_v46 }
 0x8e4   : > { %2811 = vmatprep.subr.bf16.mxu1 %v3184_v4 }
 0x8e9   : > { %2721 = vmatmul.mubr.bf16.vlgmr.msra.gmra.mrb[44].mxu0 %v4432_v55 }
 0x8ea   : > { %2762 = vmatmul.mubr.bf16.vlgmr.msra.gmra.mrb[44].mxu1 %v4434_v35  ;;  %2771 = vmatpush1.bf16.xpose.msra.mxu0 %v3181_v61 }
 0x8eb   : > { %2802 = vmatprep.mubr.bf16.mxu0 %v2322_v5  ;;  %2812 = vmatpush1.bf16.xpose.msra.mxu1 %v3183_v48 }
 0x8ec   : > { %2843 = vmatprep.mubr.bf16.mxu1 %v2324_v7  ;;  %2772 = vmatprep.subr.bf16.mxu0 %v3198_v9 }
 0x8ed   : > { %2813 = vmatprep.subr.bf16.mxu1 %v3200_v28 }
 0x8f2   : > { %2773 = vmatpush1.bf16.xpose.msra.mxu0 %v3197_v38 }
 0x8f3   : > { %2814 = vmatpush1.bf16.xpose.msra.mxu1 %v3199_v23 }
 0x8f9   : > { %2803 = vmatmul.mubr.bf16.vlgmr.msra.gmra.mrb[48].mxu0 %v2321_v19 }
 0x8fa   : > { %2844 = vmatmul.mubr.bf16.vlgmr.msra.gmra.mrb[48].mxu1 %v2323_v3 }
 0x99c   : > { %v2558_v15 = vpop.f32.mrb[36].mxu0  ;;  %v2599_v20 = vpop.f32.mrb[36].mxu1 }
 0x99d   : > { %v2559_v24 = vadd.f32 %v3168_v18, %v2558_v15  ;;  %v2560_v25 = vpop.f32.mrb[37].mxu0  ;;  %v2601_v55 = vpop.f32.mrb[37].mxu1 }
 0x99e   : > { %v2561_v35 = vpop.f32.mrb[38].mxu0  ;;  %v2602_v22 = vpop.f32.mrb[38].mxu1 }
 0x99f   : > { %v2600_v16 = vadd.f32 %v2599_v20, %v2559_v24  ;;  %v2562_v40 = vadd.f32 %v3168_v18, %v2561_v35  ;;  %v2563_v41 = vpop.f32.mrb[39].mxu0  ;;  %v2604_v58 = vpop.f32.mrb[39].mxu1  ;;  %v3201_v35 = vld [vmem:[%s746_s22] ss:$0 sm:$0xff]  ;;  %s3497_s22 = scalar_lea.vmem %s2907_s30, 256 }
 0x9a0   : > { %p3498_p6 = scmp.ne.s32.totalorder %s2907_s30, %s3497_s22  ;;  %p3505_p13 = scmp.lt.s32.totalorder %s3497_s22, %s3497_s22 }
 0x9a1   : > { %v2603_v26 = vadd.f32 %v2602_v22, %v2562_v40 }
 0x9a2   : > { %p3499_p1 = pnand %p3498_p6, %p3312_p3  ;;  %p3506_p4 = por %p3505_p13, %p3504_p9 }
 0x9a4   : > { %p3500_p2 = pneg %p3499_p1 }
 0x9a6   : > { %p3507_p5 = pnand %p3506_p4, %p3500_p2 }
 0x9ac   : > { %v2640_v50 = vpop.f32.mrb[40].mxu0  ;;  %v2681_v60 = vpop.f32.mrb[40].mxu1 }
 0x9ad   : > { %v2641_v30 = vadd.f32 %v2640_v50, %v2600_v16  ;;  %v2642_v57 = vpop.f32.mrb[41].mxu0  ;;  %v2683_v12 = vpop.f32.mrb[41].mxu1  ;;  %v3202_v16 = vld [vmem:[%s749_s9] ss:$0 sm:$0xff] }
 0x9ae   : > { %v2643_v49 = vpop.f32.mrb[42].mxu0  ;;  %v2684_v17 = vpop.f32.mrb[42].mxu1 }
 0x9af   : > { %v2682_v0 = vadd.f32 %v2681_v60, %v2641_v30  ;;  %v2644_v27 = vadd.f32 %v2643_v49, %v2603_v26  ;;  %v2645_v8 = vpop.f32.mrb[43].mxu0  ;;  %v2686_v47 = vpop.f32.mrb[43].mxu1 }
 0x9b1   : > { %v2685_v43 = vadd.f32 %v2684_v17, %v2644_v27 }
 0x9bc   : > { %v2722_v33 = vpop.f32.mrb[44].mxu0 }
 0x9bd   : > { %v2723_v6 = vadd.f32 %v2722_v33, %v2682_v0  ;;  %v2763_v44 = vpop.f32.mrb[44].mxu1  ;;  %v2724_v31 = vpop.f32.mrb[45].mxu0 }
 0x9be   : > { %v2765_v34 = vpop.f32.mrb[45].mxu1  ;;  %v2725_v42 = vpop.f32.mrb[46].mxu0 }
 0x9bf   : > { %v2764_v54 = vadd.f32 %v2763_v44, %v2723_v6  ;;  %v2726_v11 = vadd.f32 %v2725_v42, %v2685_v43  ;;  %v2766_v51 = vpop.f32.mrb[46].mxu1  ;;  %v2727_v59 = vpop.f32.mrb[47].mxu0 }
 0x9c0   : > { %v2768_v10 = vpop.f32.mrb[47].mxu1 }
 0x9c1   : > { %v2767_v62 = vadd.f32 %v2766_v51, %v2726_v11 }
 0x9cc   : > { %v2804_v1 = vpop.f32.mrb[48].mxu0 }
 0x9cd   : > { %v2805_v21 = vadd.f32 %v2804_v1, %v2764_v54  ;;  %v2845_v13 = vpop.f32.mrb[48].mxu1  ;;  %v2806_v32 = vpop.f32.mrb[49].mxu0 }
 0x9ce   : > { %v2847_v63 = vpop.f32.mrb[49].mxu1  ;;  %v2807_v19 = vpop.f32.mrb[50].mxu0 }
 0x9cf   : > { %v2846_v3 = vadd.f32 %v2845_v13, %v2805_v21  ;;  %v2808_v56 = vadd.f32 %v2807_v19, %v2767_v62  ;;  %v2848_v45 = vpop.f32.mrb[50].mxu1  ;;  %v2809_v5 = vpop.f32.mrb[51].mxu0 }
 0x9d0   : > { %v2850_v7 = vpop.f32.mrb[51].mxu1 }
 0x9d1   : > { %v2849_v29 = vadd.f32 %v2848_v45, %v2808_v56  ;;  %v2852_v53 = vadd.f32 %v2846_v3, %v4262_v52 }
 0x9d3   : > { %v2856_v46 = vsel %vm847_vm4, %v2852_v53, 0.0  ;;  %v2853_v4 = vadd.f32 %v2849_v29, %v4264_v36 }
 0x9d4   : > { %2857 = vadd.xlane.f32.xlu1 %v2856_v46 }
 0x9d5   : > { %v2859_v39 = vsel %vm847_vm4, %v2853_v4, 0.0 }
 0x9d8   : > { %2860 = vadd.xlane.f32.xlu1 %v2859_v39 }
 0xa61   : > { %v2858_v2 = vpop.xlane.xlu1 %2857 }
 0xa62   : > { %v2862_v61 = vmul.f32 0.03125, %v2858_v2 }
 0xa64   : > { %v2864_v37 = vsub.f32 %v2852_v53, %v2862_v61 }
 0xa65   : > { %v2861_v14 = vpop.xlane.xlu1 %2860 }
 0xa66   : > { %v2863_v48 = vmul.f32 0.03125, %v2861_v14  ;;  %v2866_v9 = vmul.f32 %v2864_v37, %v2864_v37 }
 0xa68   : > { %v2865_v28 = vsub.f32 %v2853_v4, %v2863_v48  ;;  %v2868_v38 = vsel %vm847_vm4, %v2866_v9, 0.0 }
 0xa69   : > { %2869 = vadd.xlane.f32.xlu0 %v2868_v38 }
 0xa6a   : > { %v2867_v52 = vmul.f32 %v2865_v28, %v2865_v28 }
 0xa6c   : > { %v2871_v23 = vsel %vm847_vm4, %v2867_v52, 0.0 }
 0xa6d   : > { %2872 = vadd.xlane.f32.xlu1 %v2871_v23 }
 0xaf6   : > { %v2870_v36 = vpop.xlane.xlu0 %2869 }
 0xaf7   : > { %v2874_v18 = vmul.f32 0.03125, %v2870_v36 }
 0xaf9   : > { %v2876_v15 = vadd.f32 1e-05, %v2874_v18 }
 0xafa   : > { %v2873_v20 = vpop.xlane.xlu1 %2872 }
 0xafb   : > { %3433 = vrsqrt.f32 %v2876_v15  ;;  %v2875_v24 = vmul.f32 0.03125, %v2873_v20 }
 0xafd   : > { %v2877_v25 = vadd.f32 1e-05, %v2875_v24 }
 0xaff   : > { %3435 = vrsqrt.f32 %v2877_v25 }
 0xb05   : > { %v3434_v55 = vpop.eup %3433 }
 0xb06   : > { %v2880_v22 = vmul.f32 %v3434_v55, %v2864_v37 }
 0xb08   : > { %v2888_v40 = vmul.f32 %v3201_v35, %v2880_v22 }
 0xb09   : > { %v3436_v41 = vpop.eup %3435 }
 0xb0a   : > { %v2881_v58 = vmul.f32 %v3436_v41, %v2865_v28  ;;  %v2896_v26 = vadd.f32 %v3202_v16, %v2888_v40 }
 0xb0c   : > { %v2889_v50 = vmul.f32 %v3201_v35, %v2881_v58  ;;  %2898 = vst.msk [vmem:[#allocation7] sm:$0xff] %vm847_vm4, %v2896_v26 }
 0xb0e   : > { %v2897_v60 = vadd.f32 %v3202_v16, %v2889_v50 }
 0xb10   : > { %2899 = vst.msk [vmem:[#allocation7 + $0x8] sm:$0xff] %vm847_vm4, %v2897_v60 }
 0xb11   : > { %3510 = shalt.err (!%p3507_p5)
}
 0xb12   : > { %s4576_s26 = sld [smem:[#allocation24_spill]] }
 0xb18   : > { %s4577_s4 = smov %s4576_s26  ;;  %s3511_s11 = scalar_lea.hbm %s4576_s26, 256 }
 0xb19   : > { %p3512_p10 = scmp.ne.s32.totalorder %s4577_s4, %s3511_s11  ;;  %p3517_p7 = scmp.lt.u32.totalorder %s3511_s11, %s4577_s4 }
 0xb1b   : > { %p3513_p12 = pnand %p3512_p10, %p3312_p3 }
 0xb1d   : > { %p3514_p0 = pneg %p3513_p12 }
 0xb1f   : > { %p3519_p8 = pnand %p3517_p7, %p3514_p0 }
 0xb21   : > { %3522 = shalt.err (!%p3519_p8)
}
 0xb22   : > { %s3580_s5 = smov 128   ;;  %s3581_s7 = smov 8  }
 0xb23   : > { %3301 = dma.vmem_to_hbm [thread:$0]  (%p3312_p3), %s2907_s30, 256, %s4577_s4, [#allocation4], %s3580_s5, %s3580_s5, %s3581_s7  }
 0xb24   : > { %3548 = dma.done.wait (%p3312_p3), [#allocation4], 256  }
 0xb25   : > { %3550 = vsyncadd (%p3312_p3), [#allocation4], 4294967040 }
 0xb26 PF: > { %s4578_s27 = sld [smem:[#allocation13_spill]]  ;;  %s4579_s24 = sld [smem:[#allocation11_spill]] }
 0xb27   : > { %s4580_s25 = sld [smem:[#allocation12_spill]]  ;;  %s4581_s26 = sld [smem:[#allocation14_spill]] }
 0xb2c   : > { %p31_p11 = scmp.ge.s32.totalorder %s4578_s27, 4  }
 0xb2e   :  { %33 = sbr.rel (!%p31_p11) target bundleno = 16 (0x10), region = 172 }
 0xb35   :  { %2922 = vsyncpa [#allocation3], 1 }
 0xb36   :  { %2924 = vsyncpa [#allocation3 + $0x1], 1 }
 0xb37   :  { %2925 = vsyncpa [#allocation6], 1 }
 0xb38   :  { %2927 = vsyncpa [#allocation6 + $0x1], 1 }
 0xb39   :  { %2928 = vsyncpa [#allocation4], 1 }
 0xb3a   :  { %2930 = vsyncpa [#allocation4 + $0x1], 1 }

</bundles_post_ra>
